<compile_context>
chip_gen: v5e
topology: v5e:2x2
jax: 0.10.0
libtpu: 0.0.40
codegen_flags: <defaults>
</compile_context>

<pallas_src>
import functools

import jax
import jax.numpy as jnp
from jax.experimental import pallas as pl
from jax.experimental.pallas import tpu as pltpu


def _encoder_kernel(x_ref, w1_ref, g1_ref, be1_ref, w2_ref, g2_ref, be2_ref,
                    out_ref,
                    s1_ref, q1_ref, sc1_ref, sh1_ref,
                    s2_ref, q2_ref, mx_ref, mn_ref,
                    *, n_total, eps):
    """Grid = (pass, batch, point_tile).  All math is channels-in-sublanes."""
    p = pl.program_id(0)          # 0: bn1-statistics pass, 1: main pass
    b = pl.program_id(1)          # batch index
    i = pl.program_id(2)          # tile index along the points axis
    nb = pl.num_programs(1)
    nt = pl.num_programs(2)
    is_first = jnp.logical_and(b == 0, i == 0)
    is_last = jnp.logical_and(b == nb - 1, i == nt - 1)

    inv_n = jnp.float32(1.0 / n_total)

    x = x_ref[0].astype(jnp.float32)                                     # (C, Tn)
    # conv1 == per-point channel matmul.  Conv bias omitted: it is cancelled
    # exactly by BatchNorm's batch-mean subtraction.
    # TODO(synk): optionally cast x / w1 / w2 to bfloat16 for the MXU (f32 accum).
    h1 = jnp.dot(w1_ref[...], x, preferred_element_type=jnp.float32)     # (64, Tn)

    # ---- pass 0: accumulate bn1 batch statistics -------------------------
    @pl.when(p == 0)
    def _pass0():
        @pl.when(is_first)
        def _init0():
            s1_ref[...] = jnp.zeros_like(s1_ref)
            q1_ref[...] = jnp.zeros_like(q1_ref)

        s1_ref[...] += jnp.sum(h1, axis=1, keepdims=True)
        q1_ref[...] += jnp.sum(h1 * h1, axis=1, keepdims=True)

    # ---- pass 1: bn1 + relu + conv2, accumulate bn2 stats & extrema ------
    @pl.when(p == 1)
    def _pass1():
        @pl.when(is_first)
        def _init1():
            # Fold bn1 into a per-channel scale/shift (computed once).
            m1 = s1_ref[...] * inv_n
            v1 = q1_ref[...] * inv_n - m1 * m1            # biased batch variance
            sc1 = g1_ref[...] * jax.lax.rsqrt(v1 + eps)
            sc1_ref[...] = sc1
            sh1_ref[...] = be1_ref[...] - m1 * sc1
            s2_ref[...] = jnp.zeros_like(s2_ref)
            q2_ref[...] = jnp.zeros_like(q2_ref)
            mx_ref[...] = jnp.full_like(mx_ref, -jnp.inf)
            mn_ref[...] = jnp.full_like(mn_ref, jnp.inf)

        a1 = jnp.maximum(h1 * sc1_ref[...] + sh1_ref[...], 0.0)          # bn1+relu
        h2 = jnp.dot(w2_ref[...], a1, preferred_element_type=jnp.float32)  # (128, Tn)

        s2_ref[...] += jnp.sum(h2, axis=1, keepdims=True)
        q2_ref[...] += jnp.sum(h2 * h2, axis=1, keepdims=True)

        # Per-(batch, channel) running extrema of pre-bn2 h2; column b of the
        # (128, B) accumulators belongs to the current batch element.
        t_max = jnp.max(h2, axis=1, keepdims=True)                       # (128, 1)
        t_min = jnp.min(h2, axis=1, keepdims=True)
        col = jax.lax.broadcasted_iota(jnp.int32, mx_ref.shape, 1)
        sel = col == b
        mx_ref[...] = jnp.where(sel, jnp.maximum(mx_ref[...], t_max), mx_ref[...])
        mn_ref[...] = jnp.where(sel, jnp.minimum(mn_ref[...], t_min), mn_ref[...])

        @pl.when(is_last)
        def _finalize():
            m2 = s2_ref[...] * inv_n
            v2 = q2_ref[...] * inv_n - m2 * m2
            sc2 = g2_ref[...] * jax.lax.rsqrt(v2 + eps)
            sh2 = be2_ref[...] - m2 * sc2
            # max_n relu(bn2(h2)) == relu(bn2(extremum)); use the max where the
            # per-channel bn scale is >= 0, the min where it is negative.
            ext = jnp.where(sc2 >= 0.0, mx_ref[...], mn_ref[...])        # (128, B)
            out_ref[...] = jnp.maximum(ext * sc2 + sh2, 0.0)


def _choose_tile_n(n, target):
    """Largest multiple of 128 that divides n and is <= target; else n itself."""
    if n % 128 != 0:
        # TODO(synk): pad + mask the points axis instead of one whole-N block.
        return n
    cand = (min(target, n) // 128) * 128
    while cand >= 128:
        if n % cand == 0:
            return cand
        cand -= 128
    return 128


def init_params(channel=9, key=None):
    if key is None:
        key = jax.random.PRNGKey(0)
    k1, k2, k3, k4 = jax.random.split(key, 4)
    # Conv1d(channel, 64, 1): weight (64, channel, 1) -> stored as (64, channel)
    w1 = 0.1 * jax.random.normal(k1, (64, channel), jnp.float32)
    b1 = 0.1 * jax.random.normal(k2, (64, 1), jnp.float32)
    # Conv1d(64, 128, 1): weight (128, 64, 1) -> stored as (128, 64)
    w2 = 0.1 * jax.random.normal(k3, (128, 64), jnp.float32)
    b2 = 0.1 * jax.random.normal(k4, (128, 1), jnp.float32)
    # BatchNorm affine params (PyTorch defaults: gamma=1, beta=0)
    g1 = jnp.ones((64, 1), jnp.float32)
    be1 = jnp.zeros((64, 1), jnp.float32)
    g2 = jnp.ones((128, 1), jnp.float32)
    be2 = jnp.zeros((128, 1), jnp.float32)
    return (w1, b1, g1, be1, w2, b2, g2, be2)


def pointnet_encoder(x_bcn, params, *, tile_n=2048, eps=1e-5):
    """x_bcn: (B, C, N) float (PyTorch NCW layout).

    Returns (global_feature (B, 128), trans (B, C, C), None), matching the
    PyTorch PointNetEncoder.forward (BatchNorm in training mode).
    """
    w1, b1, g1, be1, w2, b2, g2, be2 = params
    del b1, b2   # conv biases are cancelled exactly by train-mode BatchNorm
    B, C, N = x_bcn.shape

    # STN3d in the reference model always returns the identity, so the input
    # transform x^T @ trans is a no-op over x; skip the bmm entirely.
    trans = jnp.broadcast_to(jnp.eye(C, dtype=jnp.float32), (B, C, C))

    tile = _choose_tile_n(N, tile_n)
    n_tiles = N // tile
    grid = (2, B, n_tiles)     # (stats pass / main pass, batch, point tiles)

    kernel = functools.partial(_encoder_kernel, n_total=B * N, eps=eps)

    const = lambda p, b, i: (0, 0)
    in_specs = [
        pl.BlockSpec((1, C, tile), lambda p, b, i: (b, 0, i)),   # x tile
        pl.BlockSpec((64, C), const),      # w1
        pl.BlockSpec((64, 1), const),      # gamma1
        pl.BlockSpec((64, 1), const),      # beta1
        pl.BlockSpec((128, 64), const),    # w2
        pl.BlockSpec((128, 1), const),     # gamma2
        pl.BlockSpec((128, 1), const),     # beta2
    ]
    out_specs = pl.BlockSpec((128, B), const)
    scratch_shapes = [
        pltpu.VMEM((64, 1), jnp.float32),    # bn1 sum
        pltpu.VMEM((64, 1), jnp.float32),    # bn1 sum of squares
        pltpu.VMEM((64, 1), jnp.float32),    # bn1 folded scale
        pltpu.VMEM((64, 1), jnp.float32),    # bn1 folded shift
        pltpu.VMEM((128, 1), jnp.float32),   # bn2 sum
        pltpu.VMEM((128, 1), jnp.float32),   # bn2 sum of squares
        pltpu.VMEM((128, B), jnp.float32),   # per-batch running max of pre-bn2 h2
        pltpu.VMEM((128, B), jnp.float32),   # per-batch running min of pre-bn2 h2
    ]

    flops = 2 * B * N * (2 * C * 64 + 64 * 128)        # conv1 runs in both passes
    bytes_accessed = (2 * B * C * N * 4
                      + (64 * C + 128 * 64 + 2 * 64 + 2 * 128 + 128 * B) * 4)

    feat_cb = pl.pallas_call(
        kernel,
        out_shape=jax.ShapeDtypeStruct((128, B), jnp.float32),
        grid=grid,
        in_specs=in_specs,
        out_specs=out_specs,
        scratch_shapes=scratch_shapes,
        compiler_params=pltpu.CompilerParams(
            dimension_semantics=("arbitrary", "arbitrary", "arbitrary"),
            vmem_limit_bytes=32 * 1024 * 1024,
        ),
        cost_estimate=pl.CostEstimate(
            flops=flops, transcendentals=0, bytes_accessed=bytes_accessed),
    )(x_bcn.astype(jnp.float32), w1, g1, be1, w2, g2, be2)

    # (128, B) -> (B, 128); tiny transpose done in the wrapper.
    return feat_cb.T, trans, None


def _reference(x_bcn, params, eps=1e-5):
    """Pure-JAX replica of the PyTorch forward (train-mode BatchNorm)."""
    hp = jax.lax.Precision.HIGHEST
    w1, b1, g1, be1, w2, b2, g2, be2 = params
    B, C, N = x_bcn.shape
    x = jnp.transpose(x_bcn, (0, 2, 1)).reshape(B * N, C)
    h1 = jnp.dot(x, w1.T, precision=hp) + b1.reshape(1, -1)
    m1 = h1.mean(0)
    v1 = ((h1 - m1) ** 2).mean(0)
    h1 = jnp.maximum((h1 - m1) * jax.lax.rsqrt(v1 + eps) * g1.reshape(1, -1)
                     + be1.reshape(1, -1), 0.0)
    h2 = jnp.dot(h1, w2.T, precision=hp) + b2.reshape(1, -1)
    m2 = h2.mean(0)
    v2 = ((h2 - m2) ** 2).mean(0)
    h2 = jnp.maximum((h2 - m2) * jax.lax.rsqrt(v2 + eps) * g2.reshape(1, -1)
                     + be2.reshape(1, -1), 0.0)
    return h2.reshape(B, N, 128).max(axis=1)


if __name__ == "__main__":
    B, C, N = 2, 9, 512
    key = jax.random.PRNGKey(0)
    kx, kp = jax.random.split(key)
    x = jax.random.normal(kx, (B, C, N), jnp.float32)   # PyTorch-style (B, C, N)
    params = init_params(channel=C, key=kp)

    # tile_n=128 -> grid (2 passes, 2 batches, 4 point tiles)
    feat, trans, _ = pointnet_encoder(x, params, tile_n=128)
    feat = jax.block_until_ready(feat)
    trans = jax.block_until_ready(trans)

    assert feat.shape == (B, 128)
    assert trans.shape == (B, C, C)

    ref = _reference(x, params)
    max_err = float(jnp.max(jnp.abs(feat - ref)))
    assert jnp.allclose(feat, ref, atol=1e-2, rtol=1e-2), max_err

    print("KERNEL_OK")
</pallas_src>

<mosaic_0001>
module attributes {stable_mosaic.version = 11 : i64} {
  func.func @_encoder_kernel(%arg0: i32, %arg1: i32, %arg2: i32, %arg3: memref<1x9x128xf32, #tpu.memory_space<vmem>>, %arg4: memref<64x9xf32, #tpu.memory_space<vmem>>, %arg5: memref<64x1xf32, #tpu.memory_space<vmem>>, %arg6: memref<64x1xf32, #tpu.memory_space<vmem>>, %arg7: memref<128x64xf32, #tpu.memory_space<vmem>>, %arg8: memref<128x1xf32, #tpu.memory_space<vmem>>, %arg9: memref<128x1xf32, #tpu.memory_space<vmem>>, %arg10: memref<128x2xf32, #tpu.memory_space<vmem>>, %arg11: memref<64x1xf32, #tpu.memory_space<vmem>>, %arg12: memref<64x1xf32, #tpu.memory_space<vmem>>, %arg13: memref<64x1xf32, #tpu.memory_space<vmem>>, %arg14: memref<64x1xf32, #tpu.memory_space<vmem>>, %arg15: memref<128x1xf32, #tpu.memory_space<vmem>>, %arg16: memref<128x1xf32, #tpu.memory_space<vmem>>, %arg17: memref<128x2xf32, #tpu.memory_space<vmem>>, %arg18: memref<128x2xf32, #tpu.memory_space<vmem>>) attributes {dimension_semantics = [#tpu.dimension_semantics<arbitrary>, #tpu.dimension_semantics<arbitrary>, #tpu.dimension_semantics<arbitrary>], iteration_bounds = array<i64: 2, 2, 4>, scalar_prefetch = 0 : i64, scratch_operands = 8 : i64, tpu.core_type = #tpu.core_type<tc>, window_params = [{transform_indices = @transform_0, window_bounds = array<i64: 1, 9, 128>}, {pipeline_mode = #tpu.pipeline_mode<synchronous>, transform_indices = @transform_1, window_bounds = array<i64: 64, 9>}, {pipeline_mode = #tpu.pipeline_mode<synchronous>, transform_indices = @transform_2, window_bounds = array<i64: 64, 1>}, {pipeline_mode = #tpu.pipeline_mode<synchronous>, transform_indices = @transform_3, window_bounds = array<i64: 64, 1>}, {pipeline_mode = #tpu.pipeline_mode<synchronous>, transform_indices = @transform_4, window_bounds = array<i64: 128, 64>}, {pipeline_mode = #tpu.pipeline_mode<synchronous>, transform_indices = @transform_5, window_bounds = array<i64: 128, 1>}, {pipeline_mode = #tpu.pipeline_mode<synchronous>, transform_indices = @transform_6, window_bounds = array<i64: 128, 1>}, {pipeline_mode = #tpu.pipeline_mode<synchronous>, transform_indices = @transform_7, window_bounds = array<i64: 128, 2>}]} {
    %c0_i32 = arith.constant 0 : i32
    %0 = arith.cmpi eq, %arg1, %c0_i32 : i32
    %c0_i32_0 = arith.constant 0 : i32
    %1 = arith.cmpi eq, %arg2, %c0_i32_0 : i32
    %2 = arith.andi %0, %1 : i1
    %c1_i32 = arith.constant 1 : i32
    %3 = arith.cmpi eq, %arg1, %c1_i32 : i32
    %c3_i32 = arith.constant 3 : i32
    %4 = arith.cmpi eq, %arg2, %c3_i32 : i32
    %5 = arith.andi %3, %4 : i1
    %c0 = arith.constant 0 : index
    %c0_1 = arith.constant 0 : index
    %c0_2 = arith.constant 0 : index
    %6 = vector.load %arg3[%c0, %c0_1, %c0_2] : memref<1x9x128xf32, #tpu.memory_space<vmem>>, vector<1x9x128xf32>
    %7 = vector.shape_cast %6 : vector<1x9x128xf32> to vector<9x128xf32>
    %c0_3 = arith.constant 0 : index
    %c0_4 = arith.constant 0 : index
    %8 = vector.load %arg4[%c0_3, %c0_4] : memref<64x9xf32, #tpu.memory_space<vmem>>, vector<64x9xf32>
    %cst = arith.constant dense<0.000000e+00> : vector<64x128xf32>
    %9 = tpu.matmul %8, %7, %cst {dimension_numbers = #tpu.dot_dimension_numbers<[1], [0], [0], [1], [0, 0, 1, 1], [], []>} : vector<64x9xf32>, vector<9x128xf32>, vector<64x128xf32> -> vector<64x128xf32>
    %c0_i32_5 = arith.constant 0 : i32
    %10 = arith.cmpi eq, %arg0, %c0_i32_5 : i32
    %11 = arith.extui %10 : i1 to i32
    %c0_i32_6 = arith.constant 0 : i32
    %12 = arith.cmpi ne, %11, %c0_i32_6 : i32
    scf.if %12 {
      %16 = arith.extui %2 : i1 to i32
      %c0_i32_10 = arith.constant 0 : i32
      %17 = arith.cmpi ne, %16, %c0_i32_10 : i32
      scf.if %17 {
        %cst_21 = arith.constant 0.000000e+00 : f32
        %29 = vector.broadcast %cst_21 : f32 to vector<64x1xf32>
        %c0_22 = arith.constant 0 : index
        %c0_23 = arith.constant 0 : index
        %30 = vector.load %arg11[%c0_22, %c0_23] : memref<64x1xf32, #tpu.memory_space<vmem>>, vector<64x1xf32>
        tpu.vector_store %arg11[%c0_22, %c0_23], %29 {strides = array<i32>} : memref<64x1xf32, #tpu.memory_space<vmem>>, vector<64x1xf32>,
        %cst_24 = arith.constant 0.000000e+00 : f32
        %31 = vector.broadcast %cst_24 : f32 to vector<64x1xf32>
        %c0_25 = arith.constant 0 : index
        %c0_26 = arith.constant 0 : index
        %32 = vector.load %arg12[%c0_25, %c0_26] : memref<64x1xf32, #tpu.memory_space<vmem>>, vector<64x1xf32>
        tpu.vector_store %arg12[%c0_25, %c0_26], %31 {strides = array<i32>} : memref<64x1xf32, #tpu.memory_space<vmem>>, vector<64x1xf32>,
      } else {
      }
      %c0_11 = arith.constant 0 : index
      %c0_12 = arith.constant 0 : index
      %18 = vector.load %arg11[%c0_11, %c0_12] : memref<64x1xf32, #tpu.memory_space<vmem>>, vector<64x1xf32>
      %cst_13 = arith.constant dense<0.000000e+00> : vector<64xf32>
      %19 = vector.multi_reduction <add>, %9, %cst_13 [1] : vector<64x128xf32> to vector<64xf32>
      %20 = vector.shape_cast %19 : vector<64xf32> to vector<64x1xf32>
      %21 = arith.addf %18, %20 : vector<64x1xf32>
      %c0_14 = arith.constant 0 : index
      %c0_15 = arith.constant 0 : index
      %22 = vector.load %arg11[%c0_14, %c0_15] : memref<64x1xf32, #tpu.memory_space<vmem>>, vector<64x1xf32>
      tpu.vector_store %arg11[%c0_14, %c0_15], %21 {strides = array<i32>} : memref<64x1xf32, #tpu.memory_space<vmem>>, vector<64x1xf32>,
      %c0_16 = arith.constant 0 : index
      %c0_17 = arith.constant 0 : index
      %23 = vector.load %arg12[%c0_16, %c0_17] : memref<64x1xf32, #tpu.memory_space<vmem>>, vector<64x1xf32>
      %24 = arith.mulf %9, %9 : vector<64x128xf32>
      %cst_18 = arith.constant dense<0.000000e+00> : vector<64xf32>
      %25 = vector.multi_reduction <add>, %24, %cst_18 [1] : vector<64x128xf32> to vector<64xf32>
      %26 = vector.shape_cast %25 : vector<64xf32> to vector<64x1xf32>
      %27 = arith.addf %23, %26 : vector<64x1xf32>
      %c0_19 = arith.constant 0 : index
      %c0_20 = arith.constant 0 : index
      %28 = vector.load %arg12[%c0_19, %c0_20] : memref<64x1xf32, #tpu.memory_space<vmem>>, vector<64x1xf32>
      tpu.vector_store %arg12[%c0_19, %c0_20], %27 {strides = array<i32>} : memref<64x1xf32, #tpu.memory_space<vmem>>, vector<64x1xf32>,
    } else {
    }
    %c1_i32_7 = arith.constant 1 : i32
    %13 = arith.cmpi eq, %arg0, %c1_i32_7 : i32
    %14 = arith.extui %13 : i1 to i32
    %cst_8 = arith.constant 9.765625E-4 : f32
    %c0_i32_9 = arith.constant 0 : i32
    %15 = arith.cmpi ne, %14, %c0_i32_9 : i32
    scf.if %15 {
      %16 = arith.extui %2 : i1 to i32
      %c0_i32_10 = arith.constant 0 : i32
      %17 = arith.cmpi ne, %16, %c0_i32_10 : i32
      scf.if %17 {
        %c0_44 = arith.constant 0 : index
        %c0_45 = arith.constant 0 : index
        %60 = vector.load %arg11[%c0_44, %c0_45] : memref<64x1xf32, #tpu.memory_space<vmem>>, vector<64x1xf32>
        %61 = vector.broadcast %cst_8 : f32 to vector<64x1xf32>
        %62 = arith.mulf %60, %61 : vector<64x1xf32>
        %c0_46 = arith.constant 0 : index
        %c0_47 = arith.constant 0 : index
        %63 = vector.load %arg12[%c0_46, %c0_47] : memref<64x1xf32, #tpu.memory_space<vmem>>, vector<64x1xf32>
        %64 = vector.broadcast %cst_8 : f32 to vector<64x1xf32>
        %65 = arith.mulf %63, %64 : vector<64x1xf32>
        %66 = arith.mulf %62, %62 : vector<64x1xf32>
        %67 = arith.subf %65, %66 : vector<64x1xf32>
        %c0_48 = arith.constant 0 : index
        %c0_49 = arith.constant 0 : index
        %68 = vector.load %arg5[%c0_48, %c0_49] : memref<64x1xf32, #tpu.memory_space<vmem>>, vector<64x1xf32>
        %cst_50 = arith.constant 9.99999974E-6 : f32
        %69 = vector.broadcast %cst_50 : f32 to vector<64x1xf32>
        %70 = arith.addf %67, %69 : vector<64x1xf32>
        %71 = math.rsqrt %70 : vector<64x1xf32>
        %72 = arith.mulf %68, %71 : vector<64x1xf32>
        %c0_51 = arith.constant 0 : index
        %c0_52 = arith.constant 0 : index
        %73 = vector.load %arg13[%c0_51, %c0_52] : memref<64x1xf32, #tpu.memory_space<vmem>>, vector<64x1xf32>
        tpu.vector_store %arg13[%c0_51, %c0_52], %72 {strides = array<i32>} : memref<64x1xf32, #tpu.memory_space<vmem>>, vector<64x1xf32>,
        %c0_53 = arith.constant 0 : index
        %c0_54 = arith.constant 0 : index
        %74 = vector.load %arg6[%c0_53, %c0_54] : memref<64x1xf32, #tpu.memory_space<vmem>>, vector<64x1xf32>
        %75 = arith.mulf %62, %72 : vector<64x1xf32>
        %76 = arith.subf %74, %75 : vector<64x1xf32>
        %c0_55 = arith.constant 0 : index
        %c0_56 = arith.constant 0 : index
        %77 = vector.load %arg14[%c0_55, %c0_56] : memref<64x1xf32, #tpu.memory_space<vmem>>, vector<64x1xf32>
        tpu.vector_store %arg14[%c0_55, %c0_56], %76 {strides = array<i32>} : memref<64x1xf32, #tpu.memory_space<vmem>>, vector<64x1xf32>,
        %cst_57 = arith.constant 0.000000e+00 : f32
        %78 = vector.broadcast %cst_57 : f32 to vector<128x1xf32>
        %c0_58 = arith.constant 0 : index
        %c0_59 = arith.constant 0 : index
        %79 = vector.load %arg15[%c0_58, %c0_59] : memref<128x1xf32, #tpu.memory_space<vmem>>, vector<128x1xf32>
        tpu.vector_store %arg15[%c0_58, %c0_59], %78 {strides = array<i32>} : memref<128x1xf32, #tpu.memory_space<vmem>>, vector<128x1xf32>,
        %cst_60 = arith.constant 0.000000e+00 : f32
        %80 = vector.broadcast %cst_60 : f32 to vector<128x1xf32>
        %c0_61 = arith.constant 0 : index
        %c0_62 = arith.constant 0 : index
        %81 = vector.load %arg16[%c0_61, %c0_62] : memref<128x1xf32, #tpu.memory_space<vmem>>, vector<128x1xf32>
        tpu.vector_store %arg16[%c0_61, %c0_62], %80 {strides = array<i32>} : memref<128x1xf32, #tpu.memory_space<vmem>>, vector<128x1xf32>,
        %cst_63 = arith.constant 0xFF800000 : f32
        %82 = vector.broadcast %cst_63 : f32 to vector<128x2xf32>
        %c0_64 = arith.constant 0 : index
        %c0_65 = arith.constant 0 : index
        %83 = vector.load %arg17[%c0_64, %c0_65] : memref<128x2xf32, #tpu.memory_space<vmem>>, vector<128x2xf32>
        tpu.vector_store %arg17[%c0_64, %c0_65], %82 {strides = array<i32>} : memref<128x2xf32, #tpu.memory_space<vmem>>, vector<128x2xf32>,
        %cst_66 = arith.constant 0x7F800000 : f32
        %84 = vector.broadcast %cst_66 : f32 to vector<128x2xf32>
        %c0_67 = arith.constant 0 : index
        %c0_68 = arith.constant 0 : index
        %85 = vector.load %arg18[%c0_67, %c0_68] : memref<128x2xf32, #tpu.memory_space<vmem>>, vector<128x2xf32>
        tpu.vector_store %arg18[%c0_67, %c0_68], %84 {strides = array<i32>} : memref<128x2xf32, #tpu.memory_space<vmem>>, vector<128x2xf32>,
      } else {
      }
      %c0_11 = arith.constant 0 : index
      %c0_12 = arith.constant 0 : index
      %18 = vector.load %arg13[%c0_11, %c0_12] : memref<64x1xf32, #tpu.memory_space<vmem>>, vector<64x1xf32>
      %19 = vector.broadcast %18 : vector<64x1xf32> to vector<64x128xf32>
      %20 = arith.mulf %9, %19 : vector<64x128xf32>
      %c0_13 = arith.constant 0 : index
      %c0_14 = arith.constant 0 : index
      %21 = vector.load %arg14[%c0_13, %c0_14] : memref<64x1xf32, #tpu.memory_space<vmem>>, vector<64x1xf32>
      %22 = vector.broadcast %21 : vector<64x1xf32> to vector<64x128xf32>
      %23 = arith.addf %20, %22 : vector<64x128xf32>
      %cst_15 = arith.constant 0.000000e+00 : f32
      %24 = vector.broadcast %cst_15 : f32 to vector<64x128xf32>
      %25 = arith.maximumf %23, %24 : vector<64x128xf32>
      %c0_16 = arith.constant 0 : index
      %c0_17 = arith.constant 0 : index
      %26 = vector.load %arg7[%c0_16, %c0_17] : memref<128x64xf32, #tpu.memory_space<vmem>>, vector<128x64xf32>
      %cst_18 = arith.constant dense<0.000000e+00> : vector<128x128xf32>
      %27 = tpu.matmul %26, %25, %cst_18 {dimension_numbers = #tpu.dot_dimension_numbers<[1], [0], [0], [1], [0, 0, 1, 1], [], []>} : vector<128x64xf32>, vector<64x128xf32>, vector<128x128xf32> -> vector<128x128xf32>
      %c0_19 = arith.constant 0 : index
      %c0_20 = arith.constant 0 : index
      %28 = vector.load %arg15[%c0_19, %c0_20] : memref<128x1xf32, #tpu.memory_space<vmem>>, vector<128x1xf32>
      %cst_21 = arith.constant dense<0.000000e+00> : vector<128xf32>
      %29 = vector.multi_reduction <add>, %27, %cst_21 [1] : vector<128x128xf32> to vector<128xf32>
      %30 = vector.shape_cast %29 : vector<128xf32> to vector<128x1xf32>
      %31 = arith.addf %28, %30 : vector<128x1xf32>
      %c0_22 = arith.constant 0 : index
      %c0_23 = arith.constant 0 : index
      %32 = vector.load %arg15[%c0_22, %c0_23] : memref<128x1xf32, #tpu.memory_space<vmem>>, vector<128x1xf32>
      tpu.vector_store %arg15[%c0_22, %c0_23], %31 {strides = array<i32>} : memref<128x1xf32, #tpu.memory_space<vmem>>, vector<128x1xf32>,
      %c0_24 = arith.constant 0 : index
      %c0_25 = arith.constant 0 : index
      %33 = vector.load %arg16[%c0_24, %c0_25] : memref<128x1xf32, #tpu.memory_space<vmem>>, vector<128x1xf32>
      %34 = arith.mulf %27, %27 : vector<128x128xf32>
      %cst_26 = arith.constant dense<0.000000e+00> : vector<128xf32>
      %35 = vector.multi_reduction <add>, %34, %cst_26 [1] : vector<128x128xf32> to vector<128xf32>
      %36 = vector.shape_cast %35 : vector<128xf32> to vector<128x1xf32>
      %37 = arith.addf %33, %36 : vector<128x1xf32>
      %c0_27 = arith.constant 0 : index
      %c0_28 = arith.constant 0 : index
      %38 = vector.load %arg16[%c0_27, %c0_28] : memref<128x1xf32, #tpu.memory_space<vmem>>, vector<128x1xf32>
      tpu.vector_store %arg16[%c0_27, %c0_28], %37 {strides = array<i32>} : memref<128x1xf32, #tpu.memory_space<vmem>>, vector<128x1xf32>,
      %cst_29 = arith.constant dense<0xFF800000> : vector<128xf32>
      %39 = vector.multi_reduction <maximumf>, %27, %cst_29 [1] : vector<128x128xf32> to vector<128xf32>
      %40 = vector.shape_cast %39 : vector<128xf32> to vector<128x1xf32>
      %cst_30 = arith.constant dense<0x7F800000> : vector<128xf32>
      %41 = vector.multi_reduction <minimumf>, %27, %cst_30 [1] : vector<128x128xf32> to vector<128xf32>
      %42 = vector.shape_cast %41 : vector<128xf32> to vector<128x1xf32>
      %43 = tpu.iota {dimensions = array<i32: 1>} : vector<128x2xi32>
      %44 = vector.broadcast %arg1 : i32 to vector<128x2xi32>
      %45 = arith.cmpi eq, %43, %44 : vector<128x2xi32>
      %c0_31 = arith.constant 0 : index
      %c0_32 = arith.constant 0 : index
      %46 = vector.load %arg17[%c0_31, %c0_32] : memref<128x2xf32, #tpu.memory_space<vmem>>, vector<128x2xf32>
      %47 = vector.broadcast %40 : vector<128x1xf32> to vector<128x2xf32>
      %48 = arith.maximumf %46, %47 : vector<128x2xf32>
      %c0_33 = arith.constant 0 : index
      %c0_34 = arith.constant 0 : index
      %49 = vector.load %arg17[%c0_33, %c0_34] : memref<128x2xf32, #tpu.memory_space<vmem>>, vector<128x2xf32>
      %50 = arith.select %45, %48, %49 : vector<128x2xi1>, vector<128x2xf32>
      %c0_35 = arith.constant 0 : index
      %c0_36 = arith.constant 0 : index
      %51 = vector.load %arg17[%c0_35, %c0_36] : memref<128x2xf32, #tpu.memory_space<vmem>>, vector<128x2xf32>
      tpu.vector_store %arg17[%c0_35, %c0_36], %50 {strides = array<i32>} : memref<128x2xf32, #tpu.memory_space<vmem>>, vector<128x2xf32>,
      %c0_37 = arith.constant 0 : index
      %c0_38 = arith.constant 0 : index
      %52 = vector.load %arg18[%c0_37, %c0_38] : memref<128x2xf32, #tpu.memory_space<vmem>>, vector<128x2xf32>
      %53 = vector.broadcast %42 : vector<128x1xf32> to vector<128x2xf32>
      %54 = arith.minimumf %52, %53 : vector<128x2xf32>
      %c0_39 = arith.constant 0 : index
      %c0_40 = arith.constant 0 : index
      %55 = vector.load %arg18[%c0_39, %c0_40] : memref<128x2xf32, #tpu.memory_space<vmem>>, vector<128x2xf32>
      %56 = arith.select %45, %54, %55 : vector<128x2xi1>, vector<128x2xf32>
      %c0_41 = arith.constant 0 : index
      %c0_42 = arith.constant 0 : index
      %57 = vector.load %arg18[%c0_41, %c0_42] : memref<128x2xf32, #tpu.memory_space<vmem>>, vector<128x2xf32>
      tpu.vector_store %arg18[%c0_41, %c0_42], %56 {strides = array<i32>} : memref<128x2xf32, #tpu.memory_space<vmem>>, vector<128x2xf32>,
      %58 = arith.extui %5 : i1 to i32
      %c0_i32_43 = arith.constant 0 : i32
      %59 = arith.cmpi ne, %58, %c0_i32_43 : i32
      scf.if %59 {
        %c0_44 = arith.constant 0 : index
        %c0_45 = arith.constant 0 : index
        %60 = vector.load %arg15[%c0_44, %c0_45] : memref<128x1xf32, #tpu.memory_space<vmem>>, vector<128x1xf32>
        %61 = vector.broadcast %cst_8 : f32 to vector<128x1xf32>
        %62 = arith.mulf %60, %61 : vector<128x1xf32>
        %c0_46 = arith.constant 0 : index
        %c0_47 = arith.constant 0 : index
        %63 = vector.load %arg16[%c0_46, %c0_47] : memref<128x1xf32, #tpu.memory_space<vmem>>, vector<128x1xf32>
        %64 = vector.broadcast %cst_8 : f32 to vector<128x1xf32>
        %65 = arith.mulf %63, %64 : vector<128x1xf32>
        %66 = arith.mulf %62, %62 : vector<128x1xf32>
        %67 = arith.subf %65, %66 : vector<128x1xf32>
        %c0_48 = arith.constant 0 : index
        %c0_49 = arith.constant 0 : index
        %68 = vector.load %arg8[%c0_48, %c0_49] : memref<128x1xf32, #tpu.memory_space<vmem>>, vector<128x1xf32>
        %cst_50 = arith.constant 9.99999974E-6 : f32
        %69 = vector.broadcast %cst_50 : f32 to vector<128x1xf32>
        %70 = arith.addf %67, %69 : vector<128x1xf32>
        %71 = math.rsqrt %70 : vector<128x1xf32>
        %72 = arith.mulf %68, %71 : vector<128x1xf32>
        %c0_51 = arith.constant 0 : index
        %c0_52 = arith.constant 0 : index
        %73 = vector.load %arg9[%c0_51, %c0_52] : memref<128x1xf32, #tpu.memory_space<vmem>>, vector<128x1xf32>
        %74 = arith.mulf %62, %72 : vector<128x1xf32>
        %75 = arith.subf %73, %74 : vector<128x1xf32>
        %cst_53 = arith.constant 0.000000e+00 : f32
        %76 = vector.broadcast %cst_53 : f32 to vector<128x1xf32>
        %77 = arith.cmpf oge, %72, %76 : vector<128x1xf32>
        %c0_54 = arith.constant 0 : index
        %c0_55 = arith.constant 0 : index
        %78 = vector.load %arg17[%c0_54, %c0_55] : memref<128x2xf32, #tpu.memory_space<vmem>>, vector<128x2xf32>
        %c0_56 = arith.constant 0 : index
        %c0_57 = arith.constant 0 : index
        %79 = vector.load %arg18[%c0_56, %c0_57] : memref<128x2xf32, #tpu.memory_space<vmem>>, vector<128x2xf32>
        %80 = vector.shape_cast %77 : vector<128x1xi1> to vector<128x1xi1>
        %81 = vector.broadcast %80 : vector<128x1xi1> to vector<128x2xi1>
        %82 = arith.select %81, %78, %79 : vector<128x2xi1>, vector<128x2xf32>
        %83 = vector.broadcast %72 : vector<128x1xf32> to vector<128x2xf32>
        %84 = arith.mulf %82, %83 : vector<128x2xf32>
        %85 = vector.broadcast %75 : vector<128x1xf32> to vector<128x2xf32>
        %86 = arith.addf %84, %85 : vector<128x2xf32>
        %cst_58 = arith.constant 0.000000e+00 : f32
        %87 = vector.broadcast %cst_58 : f32 to vector<128x2xf32>
        %88 = arith.maximumf %86, %87 : vector<128x2xf32>
        %c0_59 = arith.constant 0 : index
        %c0_60 = arith.constant 0 : index
        %89 = vector.load %arg10[%c0_59, %c0_60] : memref<128x2xf32, #tpu.memory_space<vmem>>, vector<128x2xf32>
        tpu.vector_store %arg10[%c0_59, %c0_60], %88 {strides = array<i32>} : memref<128x2xf32, #tpu.memory_space<vmem>>, vector<128x2xf32>,
      } else {
      }
    } else {
    }
    return
  }
  func.func @transform_0(%arg0: i32, %arg1: i32, %arg2: i32) -> (i32, i32, i32) {
    %c0_i32 = arith.constant 0 : i32
    %c0_i32_0 = arith.constant 0 : i32
    return %arg1, %c0_i32, %arg2 : i32, i32, i32
  }
  func.func @transform_1(%arg0: i32, %arg1: i32, %arg2: i32) -> (i32, i32) {
    %c0_i32 = arith.constant 0 : i32
    %c0_i32_0 = arith.constant 0 : i32
    %c0_i32_1 = arith.constant 0 : i32
    return %c0_i32, %c0_i32_0 : i32, i32
  }
  func.func @transform_2(%arg0: i32, %arg1: i32, %arg2: i32) -> (i32, i32) {
    %c0_i32 = arith.constant 0 : i32
    %c0_i32_0 = arith.constant 0 : i32
    %c0_i32_1 = arith.constant 0 : i32
    return %c0_i32, %c0_i32_0 : i32, i32
  }
  func.func @transform_3(%arg0: i32, %arg1: i32, %arg2: i32) -> (i32, i32) {
    %c0_i32 = arith.constant 0 : i32
    %c0_i32_0 = arith.constant 0 : i32
    %c0_i32_1 = arith.constant 0 : i32
    return %c0_i32, %c0_i32_0 : i32, i32
  }
  func.func @transform_4(%arg0: i32, %arg1: i32, %arg2: i32) -> (i32, i32) {
    %c0_i32 = arith.constant 0 : i32
    %c0_i32_0 = arith.constant 0 : i32
    %c0_i32_1 = arith.constant 0 : i32
    return %c0_i32, %c0_i32_0 : i32, i32
  }
  func.func @transform_5(%arg0: i32, %arg1: i32, %arg2: i32) -> (i32, i32) {
    %c0_i32 = arith.constant 0 : i32
    %c0_i32_0 = arith.constant 0 : i32
    %c0_i32_1 = arith.constant 0 : i32
    return %c0_i32, %c0_i32_0 : i32, i32
  }
  func.func @transform_6(%arg0: i32, %arg1: i32, %arg2: i32) -> (i32, i32) {
    %c0_i32 = arith.constant 0 : i32
    %c0_i32_0 = arith.constant 0 : i32
    %c0_i32_1 = arith.constant 0 : i32
    return %c0_i32, %c0_i32_0 : i32, i32
  }
  func.func @transform_7(%arg0: i32, %arg1: i32, %arg2: i32) -> (i32, i32) {
    %c0_i32 = arith.constant 0 : i32
    %c0_i32_0 = arith.constant 0 : i32
    %c0_i32_1 = arith.constant 0 : i32
    return %c0_i32, %c0_i32_0 : i32, i32
  }
}

</mosaic_0001>

<bundles_post_ra>
// kernel: tpu_custom_call.1
= control target key start
LH: loop header
LB: loop body
LE: loop exit
PB: predicated region body
PF: predicated region fallthrough
CT: control target
= control target key end

     0   :  { %s2506_s24 = smov 0   ;;  %s2508_s25 = smov 0   ;;  %s3997_s0 = inlined_call_operand.vmem [shape: f32[2,9,512], index: 0, kind: input, shape index: {}]   ;;  %s3998_s1 = inlined_call_operand.vmem [shape: f32[64,9], index: 1, kind: input, shape index: {}]   ;;  %s3999_s2 = inlined_call_operand.vmem [shape: f32[64,1], index: 2, kind: input, shape index: {}]   ;;  %s4000_s3 = inlined_call_operand.vmem [shape: f32[64,1], index: 3, kind: input, shape index: {}]   ;;  %s4001_s4 = inlined_call_operand.vmem [shape: f32[128,64], index: 4, kind: input, shape index: {}]   ;;  %s4002_s5 = inlined_call_operand.vmem [shape: f32[128,1], index: 5, kind: input, shape index: {}]   ;;  %s4003_s6 = inlined_call_operand.vmem [shape: f32[128,1], index: 6, kind: input, shape index: {}]   ;;  %s4004_s7 = inlined_call_operand.vmem [shape: f32[128,2], index: 7, kind: output, shape index: {}]  }
   0x1   :  { %s2510_s26 = smov 0   ;;  %s2512_s27 = smov 0  }
   0x2   :  { %s2514_s28 = smov 0   ;;  %s2516_s29 = smov 0  }
   0x3   :  { %s2518_s30 = smov 0   ;;  %s2520_s8 = smov 0  }
   0x4   :  { %s2522_s9 = smov 0  }
   0x5 LB: > { %s29_s10 = sadd.s32 1, %s2446_s29  ;;  %s32_s11 = sadd.s32 1, %s2450_s30  ;;  %s2458_s9 = sphi %s2522_s9, %s17_s9   ;;  %s2454_s8 = sphi %s2520_s8, %s4061_s8   ;;  %s2450_s30 = sphi %s2518_s30, %s4060_s30   ;;  %s2446_s29 = sphi %s2516_s29, %s4059_s29   ;;  %s2442_s28 = sphi %s2514_s28, %s4058_s28   ;;  %s2438_s27 = sphi %s2512_s27, %s4057_s27   ;;  %s2434_s26 = sphi %s2510_s26, %s4056_s26   ;;  %s2430_s25 = sphi %s2508_s25, %s4055_s25   ;;  %s2426_s24 = sphi %s2506_s24, %s4054_s24  }
   0x6   : > { %p30_p0 = scmp.ge.s32.totalorder %s29_s10, 4  ;;  %p52_p1 = scmp.ne.s32.totalorder %s2430_s25, %s2426_s24 }
   0x7   : > { %p53_p2 = scmp.eq.s32.totalorder %s2458_s9, 0  ;;  %s36_s12 = sadd.s32 1, %s2454_s8 }
   0x8   : > { %s4063_s10 = smov (%p30_p0, %s29_s10), 0  ;;  %s4065_s11 = smov (!%p30_p0, %s32_s11), %s2450_s30 }
   0x9   : > { %p34_p3 = scmp.ge.s32.totalorder %s4065_s11, 2  ;;  %s41_s13 = ssub.s32 %s2446_s29, %s4063_s10 }
   0xa   : > { %p54_p4 = por %p53_p2, %p52_p1  ;;  %s45_s15 = sadd.s32 1, %s2430_s25 }
   0xb   : > { %s4067_s11 = smov (%p34_p3, %s4065_s11), 0  ;;  %s4069_s12 = smov (!%p34_p3, %s36_s12), %s2454_s8 }
   0xc   : > { %4006 = sst [smem:[#allocation11_spill]] %s4067_s11  ;;  %s40_s14 = ssub.s32 %s2450_s30, %s4067_s11 }
   0xd   : > { %p38_p5 = scmp.ge.s32.totalorder %s4069_s12, 2  ;;  %s42_s16 = sor.u32 %s41_s13, %s40_s14 }
   0xe   : > { %p43_p6 = scmp.eq.s32.totalorder %s42_s16, 0  ;;  %p2191_p7 = scmp.ge.s32.totalorder %s2458_s9, 16 }
   0xf   : > { %s4071_s12 = smov (%p38_p5, %s4069_s12), 0 }
  0x10   : > { %s2571_s17 = scalar_select %p43_p6, %s2430_s25, %s45_s15  }
  0x11   : > { %243 = sbr.rel (%p2191_p7) target bundleno = 30 (0x1e), region = 40 }
  0x16   : > { %246 = sbr.rel (!%p54_p4) target bundleno = 30 (0x1e), region = 44  ;;  %s248_s18 = sand.u32 (%p54_p4), 1, %s2430_s25  }
  0x17   : > { %s2193_s19 = sshll.u32 (%p54_p4), %s2450_s30, 3  ;;  %s2192_s20 = sshll.u32 (%p54_p4), %s248_s18, 4 }
  0x18   : > { %s252_s21 = sadd.s32 (%p54_p4), %s2446_s29, %s2193_s19  ;;  %s250_s14 = scalar_lea.vmem (%p54_p4), [#allocation10], %s2192_s20 }
  0x19   : > { %s2194_s22 = sshll.u32 (%p54_p4), %s252_s21, 3 }
  0x1a   : > { %s254_s13 = scalar_lea.vmem (%p54_p4), %s3997_s0, %s2194_s22 }
  0x1b   : > { %v285_v0 = vld [vmem:[%s254_s13] sm:$0xff] }
  0x1c   : > { %v287_v1 = vld [vmem:[%s254_s13 + $0x20] sm:$0xff]  ;;  %286 = vst [vmem:[%s250_s14] sm:$0xff] %v285_v0 }
  0x1d   : > { %288 = vst [vmem:[%s250_s14 + $0x8] sm:$0xff] %v287_v1 }
  0x1e PF: > { %p2195_p8 = scmp.ge.s32.totalorder %s2458_s9, 1  ;;  %p293_p9 = scmp.lt.s32.totalorder %s2458_s9, 17 }
  0x20   : > { %p294_p10 = pnand %p2195_p8, %p293_p9 }
  0x21   : > { %s300_s11 = sand.u32 (!%p294_p10), 1, %s2426_s24   ;;  %p326_p11 = scmp.eq.s32.totalorder (!%p294_p10), %s2438_s27, 0 }
  0x22   : > { %297 = sbr.rel (%p294_p10) target bundleno = 1321 (0x529), region = 82  ;;  %s2196_s15 = sshll.u32 (!%p294_p10), %s300_s11, 4 }
  0x23   : > { %p327_p12 = scmp.eq.s32.totalorder (!%p294_p10), %s2434_s26, 0  ;;  %p330_p13 = scmp.eq.s32.totalorder (!%p294_p10), %s2438_s27, 1 }
  0x24   : > { %s302_s16 = scalar_lea.vmem (!%p294_p10), [#allocation10], %s2196_s15  ;;  %p331_p1 = scmp.eq.s32.totalorder (!%p294_p10), %s2434_s26, 3 }
  0x25   : > { %p2586_p0 = pnand (!%p294_p10), %p327_p12, %p326_p11  ;;  %p2206_p3 = scmp.ne.s32.totalorder (!%p294_p10), %s2442_s28, 0 }
  0x26   : > { %p2597_p2 = pnand (!%p294_p10), %p331_p1, %p330_p13 }
  0x27   : > { %vm369_vm0 = vcmask 1040384   ;;  %v335_v2 = vld [vmem:[%s302_s16 + $0x8] sm:$0x1]  ;;  %v334_v3 = vld [vmem:[%s302_s16] sm:$0xff]  ;;  %vm344_vm1 = vcmask 72704  }
  0x28   : > { %2227 = vmatpush.msk.msra.mxu2 %vm369_vm0, %v335_v2  ;;  %2228 = vmatpush.msk.msra.mxu3 %vm369_vm0, %v335_v2  ;;  %v340_v4 = vld [vmem:[%s3998_s1 + $0x20] sm:$0xff]  ;;  %v342_v5 = vld [vmem:[%s3998_s1 + $0x30] sm:$0xff]  ;;  %v341_v8 = vld [vmem:[%s3998_s1 + $0x28] sm:$0xff] }
  0x29   : > { %2197 = vmatpush.msk.msra.mxu0 %vm369_vm0, %v335_v2  ;;  %2226 = vmatpush.msk.msra.mxu1 %vm369_vm0, %v335_v2  ;;  %v336_v6 = vld [vmem:[%s3998_s1] sm:$0xff]  ;;  %v338_v7 = vld [vmem:[%s3998_s1 + $0x10] sm:$0xff]  ;;  %v343_v9 = vld [vmem:[%s3998_s1 + $0x38] sm:$0xff] }
  0x2a   : > { %2230 = vmatpush.msra.mxu2 %v334_v3  ;;  %2231 = vmatpush.msra.mxu3 %v334_v3  ;;  %v337_v10 = vld [vmem:[%s3998_s1 + $0x8] sm:$0xff]  ;;  %v339_v11 = vld [vmem:[%s3998_s1 + $0x18] sm:$0xff] }
  0x2b   : > { %2202 = vmatmul.msk.f32.vlgmr.msra.gmra.mxu2 %vm344_vm1, %v340_v4  ;;  %2204 = vmatmul.msk.f32.vlgmr.msra.gmra.mxu3 %vm344_vm1, %v342_v5 }
  0x2c   : > { %388 = vmatpush.msra.mxu0 %v334_v3  ;;  %2229 = vmatpush.msra.mxu1 %v334_v3 }
  0x2d   : > { %2198 = vmatmul.msk.f32.vlgmr.msra.gmra.mxu0 %vm344_vm1, %v336_v6  ;;  %2200 = vmatmul.msk.f32.vlgmr.msra.gmra.mxu1 %vm344_vm1, %v338_v7 }
  0x33   : > { %2203 = vmatmul.msk.f32.gmra.mxu2 %vm344_vm1, %v341_v8  ;;  %2205 = vmatmul.msk.f32.gmra.mxu3 %vm344_vm1, %v343_v9 }
  0x35   : > { %2199 = vmatmul.msk.f32.gmra.mxu0 %vm344_vm1, %v337_v10  ;;  %2201 = vmatmul.msk.f32.gmra.mxu1 %vm344_vm1, %v339_v11 }
  0xaa   : > { %v2627_v12 = vpop.f32.mrf.mxu0  ;;  %v2629_v13 = vpop.f32.mrf.mxu1 }
  0xae   : > { %v2631_v14 = vpop.f32.mrf.mxu2  ;;  %v2633_v15 = vpop.f32.mrf.mxu3 }
  0xb2   : > { %v2635_v16 = vpop.f32.mrf.mxu0  ;;  %v2637_v17 = vpop.f32.mrf.mxu1  ;;  %417 = sbr.rel (%p2206_p3) target bundleno = 364 (0x16c), region = 90 }
  0xb6   : > { %v2639_v18 = vpop.f32.mrf.mxu2  ;;  %v2641_v19 = vpop.f32.mrf.mxu3 }
  0xb7   : > { %419 = sbr.rel (%p2586_p0) target bundleno = 205 (0xcd), region = 94 }
  0xbc   : > { %vm420_vm2 = vcmask 7168   ;;  %v2460_v20 = vmov 0.0  }
  0xbd   : > { %421 = vst.msk [vmem:[#allocation2] sm:$0xff] %vm420_vm2, %v2460_v20 }
  0xbe   : > { %422 = vst.msk [vmem:[#allocation2 + $0x8] sm:$0xff] %vm420_vm2, %v2460_v20 }
  0xbf   : > { %423 = vst.msk [vmem:[#allocation2 + $0x10] sm:$0xff] %vm420_vm2, %v2460_v20 }
  0xc0   : > { %424 = vst.msk [vmem:[#allocation2 + $0x18] sm:$0xff] %vm420_vm2, %v2460_v20 }
  0xc1   : > { %425 = vst.msk [vmem:[#allocation2 + $0x20] sm:$0xff] %vm420_vm2, %v2460_v20 }
  0xc2   : > { %426 = vst.msk [vmem:[#allocation2 + $0x28] sm:$0xff] %vm420_vm2, %v2460_v20 }
  0xc3   : > { %427 = vst.msk [vmem:[#allocation2 + $0x30] sm:$0xff] %vm420_vm2, %v2460_v20 }
  0xc4   : > { %428 = vst.msk [vmem:[#allocation2 + $0x38] sm:$0xff] %vm420_vm2, %v2460_v20 }
  0xc5   : > { %429 = vst.msk [vmem:[#allocation3] sm:$0xff] %vm420_vm2, %v2460_v20 }
  0xc6   : > { %430 = vst.msk [vmem:[#allocation3 + $0x8] sm:$0xff] %vm420_vm2, %v2460_v20 }
  0xc7   : > { %431 = vst.msk [vmem:[#allocation3 + $0x10] sm:$0xff] %vm420_vm2, %v2460_v20 }
  0xc8   : > { %432 = vst.msk [vmem:[#allocation3 + $0x18] sm:$0xff] %vm420_vm2, %v2460_v20 }
  0xc9   : > { %433 = vst.msk [vmem:[#allocation3 + $0x20] sm:$0xff] %vm420_vm2, %v2460_v20 }
  0xca   : > { %434 = vst.msk [vmem:[#allocation3 + $0x28] sm:$0xff] %vm420_vm2, %v2460_v20 }
  0xcb   : > { %435 = vst.msk [vmem:[#allocation3 + $0x30] sm:$0xff] %vm420_vm2, %v2460_v20 }
  0xcc   : > { %436 = vst.msk [vmem:[#allocation3 + $0x38] sm:$0xff] %vm420_vm2, %v2460_v20 }
  0xcd PF: > { %445 = vadd.xlane.f32.xlu0 %v2627_v12  ;;  %453 = vadd.xlane.f32.xlu2 %v2631_v14  ;;  %v486_v21 = vmul.f32 %v2627_v12, %v2627_v12  ;;  %v487_v22 = vmul.f32 %v2635_v16, %v2635_v16  ;;  %v489_v23 = vmul.f32 %v2637_v17, %v2637_v17  ;;  %v437_v29 = vld [vmem:[#allocation2] sm:$0xff]  ;;  %v439_v31 = vld [vmem:[#allocation2 + $0x10] sm:$0xff]  ;;  %vm469_vm3 = vcmask 7168   ;;  %v438_v38 = vld [vmem:[#allocation2 + $0x8] sm:$0xff] }
  0xce   : > { %449 = vadd.xlane.f32.xlu1 %v2629_v13  ;;  %v488_v24 = vmul.f32 %v2629_v13, %v2629_v13  ;;  %v490_v25 = vmul.f32 %v2631_v14, %v2631_v14  ;;  %v492_v26 = vmul.f32 %v2633_v15, %v2633_v15  ;;  %v491_v27 = vmul.f32 %v2639_v18, %v2639_v18  ;;  %v441_v30 = vld [vmem:[#allocation2 + $0x20] sm:$0xff]  ;;  %v442_v39 = vld [vmem:[#allocation2 + $0x28] sm:$0xff]  ;;  %v440_v40 = vld [vmem:[#allocation2 + $0x18] sm:$0xff] }
  0xcf   : > { %v493_v28 = vmul.f32 %v2641_v19, %v2641_v19  ;;  %v443_v47 = vld [vmem:[#allocation2 + $0x30] sm:$0xff]  ;;  %v478_v48 = vld [vmem:[#allocation3] sm:$0xff]  ;;  %v444_v49 = vld [vmem:[#allocation2 + $0x38] sm:$0xff] }
  0xd0   : > { %v479_v56 = vld [vmem:[#allocation3 + $0x8] sm:$0xff]  ;;  %v481_v57 = vld [vmem:[#allocation3 + $0x18] sm:$0xff]  ;;  %v480_v58 = vld [vmem:[#allocation3 + $0x10] sm:$0xff] }
  0xd1   : > { %v482_v1 = vld [vmem:[#allocation3 + $0x20] sm:$0xff]  ;;  %v483_v3 = vld [vmem:[#allocation3 + $0x28] sm:$0xff] }
  0xd2   : > { %v484_v2 = vld [vmem:[#allocation3 + $0x30] sm:$0xff] }
  0xd3   : > { %v485_v10 = vld [vmem:[#allocation3 + $0x38] sm:$0xff] }
  0xd5   : > { %447 = vadd.xlane.f32.xlu0 %v2635_v16  ;;  %455 = vadd.xlane.f32.xlu2 %v2639_v18 }
  0xd6   : > { %451 = vadd.xlane.f32.xlu1 %v2637_v17 }
  0xdd   : > { %457 = vadd.xlane.f32.xlu0 %v2633_v15  ;;  %494 = vadd.xlane.f32.xlu2 %v486_v21 }
  0xde   : > { %459 = vadd.xlane.f32.xlu1 %v2641_v19 }
  0xe5   : > { %496 = vadd.xlane.f32.xlu0 %v487_v22  ;;  %500 = vadd.xlane.f32.xlu2 %v489_v23 }
  0xe6   : > { %498 = vadd.xlane.f32.xlu1 %v488_v24 }
  0xed   : > { %502 = vadd.xlane.f32.xlu0 %v490_v25  ;;  %506 = vadd.xlane.f32.xlu2 %v492_v26 }
  0xee   : > { %504 = vadd.xlane.f32.xlu1 %v491_v27 }
  0xf5   : > { %508 = vadd.xlane.f32.xlu0 %v493_v28 }
 0x140   : > { %v446_v32 = vpop.xlane.xlu0 %445  ;;  %v454_v33 = vpop.xlane.xlu2 %453 }
 0x141   : > { %v461_v34 = vadd.f32 %v446_v32, %v437_v29  ;;  %v465_v35 = vadd.f32 %v454_v33, %v441_v30  ;;  %v450_v36 = vpop.xlane.xlu1 %449 }
 0x142   : > { %v463_v37 = vadd.f32 %v450_v36, %v439_v31 }
 0x143   : > { %470 = vst.msk [vmem:[#allocation2] sm:$0xff] %vm469_vm3, %v461_v34 }
 0x144   : > { %474 = vst.msk [vmem:[#allocation2 + $0x20] sm:$0xff] %vm469_vm3, %v465_v35 }
 0x145   : > { %472 = vst.msk [vmem:[#allocation2 + $0x10] sm:$0xff] %vm469_vm3, %v463_v37 }
 0x148   : > { %v448_v41 = vpop.xlane.xlu0 %447  ;;  %v456_v42 = vpop.xlane.xlu2 %455 }
 0x149   : > { %v462_v43 = vadd.f32 %v448_v41, %v438_v38  ;;  %v466_v44 = vadd.f32 %v456_v42, %v442_v39  ;;  %v452_v45 = vpop.xlane.xlu1 %451 }
 0x14a   : > { %v464_v46 = vadd.f32 %v452_v45, %v440_v40 }
 0x14b   : > { %471 = vst.msk [vmem:[#allocation2 + $0x8] sm:$0xff] %vm469_vm3, %v462_v43 }
 0x14c   : > { %475 = vst.msk [vmem:[#allocation2 + $0x28] sm:$0xff] %vm469_vm3, %v466_v44 }
 0x14d   : > { %473 = vst.msk [vmem:[#allocation2 + $0x18] sm:$0xff] %vm469_vm3, %v464_v46 }
 0x150   : > { %v458_v50 = vpop.xlane.xlu0 %457  ;;  %v495_v51 = vpop.xlane.xlu2 %494 }
 0x151   : > { %v467_v52 = vadd.f32 %v458_v50, %v443_v47  ;;  %v460_v53 = vpop.xlane.xlu1 %459  ;;  %v510_v54 = vadd.f32 %v495_v51, %v478_v48 }
 0x152   : > { %v468_v55 = vadd.f32 %v460_v53, %v444_v49 }
 0x153   : > { %476 = vst.msk [vmem:[#allocation2 + $0x30] sm:$0xff] %vm469_vm3, %v467_v52 }
 0x154   : > { %477 = vst.msk [vmem:[#allocation2 + $0x38] sm:$0xff] %vm469_vm3, %v468_v55 }
 0x155   : > { %518 = vst.msk [vmem:[#allocation3] sm:$0xff] %vm469_vm3, %v510_v54 }
 0x158   : > { %v497_v59 = vpop.xlane.xlu0 %496  ;;  %v501_v60 = vpop.xlane.xlu2 %500 }
 0x159   : > { %v511_v61 = vadd.f32 %v497_v59, %v479_v56  ;;  %v499_v62 = vpop.xlane.xlu1 %498  ;;  %v513_v63 = vadd.f32 %v501_v60, %v481_v57 }
 0x15a   : > { %v512_v0 = vadd.f32 %v499_v62, %v480_v58 }
 0x15b   : > { %519 = vst.msk [vmem:[#allocation3 + $0x8] sm:$0xff] %vm469_vm3, %v511_v61 }
 0x15c   : > { %520 = vst.msk [vmem:[#allocation3 + $0x10] sm:$0xff] %vm469_vm3, %v512_v0 }
 0x15d   : > { %521 = vst.msk [vmem:[#allocation3 + $0x18] sm:$0xff] %vm469_vm3, %v513_v63 }
 0x160   : > { %v503_v4 = vpop.xlane.xlu0 %502  ;;  %v507_v5 = vpop.xlane.xlu2 %506 }
 0x161   : > { %v514_v6 = vadd.f32 %v503_v4, %v482_v1  ;;  %v505_v7 = vpop.xlane.xlu1 %504  ;;  %v516_v8 = vadd.f32 %v507_v5, %v484_v2 }
 0x162   : > { %v515_v9 = vadd.f32 %v505_v7, %v483_v3 }
 0x163   : > { %522 = vst.msk [vmem:[#allocation3 + $0x20] sm:$0xff] %vm469_vm3, %v514_v6 }
 0x164   : > { %523 = vst.msk [vmem:[#allocation3 + $0x28] sm:$0xff] %vm469_vm3, %v515_v9 }
 0x165   : > { %524 = vst.msk [vmem:[#allocation3 + $0x30] sm:$0xff] %vm469_vm3, %v516_v8 }
 0x168   : > { %v509_v11 = vpop.xlane.xlu0 %508 }
 0x169   : > { %v517_v20 = vadd.f32 %v509_v11, %v485_v10 }
 0x16b   : > { %525 = vst.msk [vmem:[#allocation3 + $0x38] sm:$0xff] %vm469_vm3, %v517_v20 }
 0x16c PF: > { %p2207_p4 = scmp.ne.s32.totalorder %s2442_s28, 1 }
 0x16e   : > { %529 = sbr.rel (%p2207_p4) target bundleno = 1321 (0x529), region = 98 }
 0x173   : > { %531 = sbr.rel (%p2586_p0) target bundleno = 460 (0x1cc), region = 102 }
 0x178   : > { %v532_v21 = vld [vmem:[#allocation2] sm:$0xff]  ;;  %v533_v25 = vld [vmem:[#allocation2 + $0x8] sm:$0xff]  ;;  %v534_v29 = vld [vmem:[#allocation2 + $0x10] sm:$0xff]  ;;  %vm684_vm4 = vcmask 7168   ;;  %v2461_v20 = vmov 0.0  }
 0x179   : > { %v548_v22 = vld [vmem:[#allocation3] sm:$0xff]  ;;  %v2705_v23 = vmul.f32 0.0009765625, %v532_v21  ;;  %v549_v26 = vld [vmem:[#allocation3 + $0x8] sm:$0xff]  ;;  %v2707_v27 = vmul.f32 0.0009765625, %v533_v25  ;;  %v550_v30 = vld [vmem:[#allocation3 + $0x10] sm:$0xff]  ;;  %v2711_v32 = vmul.f32 0.0009765625, %v534_v29 }
 0x17a   : > { %v556_v24 = vmul.f32 0.0009765625, %v548_v22  ;;  %v557_v28 = vmul.f32 0.0009765625, %v549_v26  ;;  %v558_v33 = vmul.f32 0.0009765625, %v550_v30  ;;  %v535_v34 = vld [vmem:[#allocation2 + $0x18] sm:$0xff]  ;;  %v536_v39 = vld [vmem:[#allocation2 + $0x20] sm:$0xff]  ;;  %v537_v45 = vld [vmem:[#allocation2 + $0x28] sm:$0xff] }
 0x17b   : > { %v564_v31 = vmul.f32 %v2705_v23, %v2705_v23  ;;  %v551_v35 = vld [vmem:[#allocation3 + $0x18] sm:$0xff]  ;;  %v565_v36 = vmul.f32 %v2707_v27, %v2707_v27  ;;  %v2715_v37 = vmul.f32 0.0009765625, %v535_v34  ;;  %v552_v40 = vld [vmem:[#allocation3 + $0x20] sm:$0xff]  ;;  %v566_v42 = vmul.f32 %v2711_v32, %v2711_v32  ;;  %v553_v46 = vld [vmem:[#allocation3 + $0x28] sm:$0xff]  ;;  %725 = vst.msk [vmem:[#allocation6] sm:$0xff] %vm684_vm4, %v2461_v20 }
 0x17c   : > { %v559_v38 = vmul.f32 0.0009765625, %v551_v35  ;;  %v2719_v43 = vmul.f32 0.0009765625, %v536_v39  ;;  %v560_v44 = vmul.f32 0.0009765625, %v552_v40  ;;  %v2723_v49 = vmul.f32 0.0009765625, %v537_v45  ;;  %v538_v51 = vld [vmem:[#allocation2 + $0x30] sm:$0xff]  ;;  %v539_v63 = vld [vmem:[#allocation2 + $0x38] sm:$0xff] }
 0x17d   : > { %v572_v41 = vsub.f32 %v556_v24, %v564_v31  ;;  %v573_v47 = vsub.f32 %v557_v28, %v565_v36  ;;  %v567_v48 = vmul.f32 %v2715_v37, %v2715_v37  ;;  %v561_v50 = vmul.f32 0.0009765625, %v553_v46  ;;  %v554_v52 = vld [vmem:[#allocation3 + $0x30] sm:$0xff]  ;;  %v555_v2 = vld [vmem:[#allocation3 + $0x38] sm:$0xff]  ;;  %726 = vst.msk [vmem:[#allocation6 + $0x8] sm:$0xff] %vm684_vm4, %v2461_v20 }
 0x17e   : > { %v574_v54 = vsub.f32 %v558_v33, %v566_v42  ;;  %v568_v55 = vmul.f32 %v2719_v43, %v2719_v43  ;;  %v2729_v56 = vmul.f32 0.0009765625, %v538_v51  ;;  %v569_v59 = vmul.f32 %v2723_v49, %v2723_v49  ;;  %727 = vst.msk [vmem:[#allocation6 + $0x10] sm:$0xff] %vm684_vm4, %v2461_v20 }
 0x17f   : > { %v2725_v53 = vadd.f32 1e-05, %v572_v41  ;;  %v2731_v57 = vadd.f32 1e-05, %v573_v47  ;;  %v575_v58 = vsub.f32 %v559_v38, %v567_v48  ;;  %v562_v62 = vmul.f32 0.0009765625, %v554_v52  ;;  %728 = vst.msk [vmem:[#allocation6 + $0x18] sm:$0xff] %vm684_vm4, %v2461_v20 }
 0x180   : > { %v2736_v60 = vadd.f32 1e-05, %v574_v54  ;;  %v576_v61 = vsub.f32 %v560_v44, %v568_v55  ;;  %v577_v1 = vsub.f32 %v561_v50, %v569_v59  ;;  %v570_v4 = vmul.f32 %v2729_v56, %v2729_v56  ;;  %729 = vst.msk [vmem:[#allocation6 + $0x20] sm:$0xff] %vm684_vm4, %v2461_v20  ;;  %v580_v55 = vld [vmem:[%s3999_s2] sm:$0xff] }
 0x181   : > { %2334 = vrsqrt.f32 %v2725_v53  ;;  %v2739_v0 = vadd.f32 1e-05, %v575_v58  ;;  %v2749_v6 = vmul.f32 0.0009765625, %v539_v63  ;;  %v563_v8 = vmul.f32 0.0009765625, %v555_v2  ;;  %730 = vst.msk [vmem:[#allocation6 + $0x28] sm:$0xff] %vm684_vm4, %v2461_v20  ;;  %v581_v63 = vld [vmem:[%s3999_s2 + $0x8] sm:$0xff] }
 0x182   : > { %2336 = vrsqrt.f32 %v2731_v57  ;;  %v2742_v3 = vadd.f32 1e-05, %v576_v61  ;;  %v2747_v5 = vadd.f32 1e-05, %v577_v1  ;;  %v578_v7 = vsub.f32 %v562_v62, %v570_v4  ;;  %731 = vst.msk [vmem:[#allocation6 + $0x30] sm:$0xff] %vm684_vm4, %v2461_v20 }
 0x183   : > { %2338 = vrsqrt.f32 %v2736_v60  ;;  %v571_v9 = vmul.f32 %v2749_v6, %v2749_v6  ;;  %vm602_vm5 = vweird.f32 %v2725_v53  ;;  %vm612_vm6 = vweird.f32 %v2731_v57  ;;  %732 = vst.msk [vmem:[#allocation6 + $0x38] sm:$0xff] %vm684_vm4, %v2461_v20 }
 0x184   : > { %2340 = vrsqrt.f32 %v2739_v0  ;;  %v2759_v11 = vadd.f32 1e-05, %v578_v7  ;;  %vm622_vm7 = vweird.f32 %v2736_v60  ;;  %vm632_vm8 = vweird.f32 %v2739_v0  ;;  %733 = vst.msk [vmem:[#allocation6 + $0x40] sm:$0xff] %vm684_vm4, %v2461_v20 }
 0x185   : > { %2342 = vrsqrt.f32 %v2742_v3  ;;  %v579_v24 = vsub.f32 %v563_v8, %v571_v9  ;;  %vm642_vm9 = vweird.f32 %v2742_v3  ;;  %vm652_vm10 = vweird.f32 %v2747_v5  ;;  %734 = vst.msk [vmem:[#allocation6 + $0x48] sm:$0xff] %vm684_vm4, %v2461_v20 }
 0x186   : > { %2344 = vrsqrt.f32 %v2747_v5  ;;  %vm662_vm15 = vweird.f32 %v2759_v11  ;;  %735 = vst.msk [vmem:[#allocation6 + $0x50] sm:$0xff] %vm684_vm4, %v2461_v20 }
 0x187   : > { %v2755_v10 = vpop.eup %2334  ;;  %2346 = vrsqrt.f32 %v2759_v11  ;;  %v2786_v31 = vadd.f32 1e-05, %v579_v24  ;;  %736 = vst.msk [vmem:[#allocation6 + $0x58] sm:$0xff] %vm684_vm4, %v2461_v20 }
 0x188   : > { %v2763_v21 = vpop.eup %2336  ;;  %v597_v22 = vmul.f32 %v2755_v10, %v2725_v53  ;;  %vm603_vm11 = vweird.f32 %v2755_v10  ;;  %737 = vst.msk [vmem:[#allocation6 + $0x60] sm:$0xff] %vm684_vm4, %v2461_v20 }
 0x189   : > { %v2771_v25 = vpop.eup %2338  ;;  %v607_v26 = vmul.f32 %v2763_v21, %v2731_v57  ;;  %vm613_vm12 = vweird.f32 %v2763_v21  ;;  %2348 = vrsqrt.f32 %v2786_v31  ;;  %vm2824_vm1 = vmor %vm602_vm5, %vm603_vm11  ;;  %vm672_vm11 = vweird.f32 %v2786_v31  ;;  %738 = vst.msk [vmem:[#allocation6 + $0x68] sm:$0xff] %vm684_vm4, %v2461_v20 }
 0x18a   : > { %v2780_v28 = vpop.eup %2340  ;;  %v598_v29 = vmul.f32 %v2755_v10, %v597_v22  ;;  %v617_v30 = vmul.f32 %v2771_v25, %v2736_v60  ;;  %vm623_vm13 = vweird.f32 %v2771_v25  ;;  %vm2840_vm3 = vmor %vm612_vm6, %vm613_vm12  ;;  %v582_v60 = vld [vmem:[%s3999_s2 + $0x10] sm:$0xff]  ;;  %739 = vst.msk [vmem:[#allocation6 + $0x70] sm:$0xff] %vm684_vm4, %v2461_v20 }
 0x18b   : > { %v2790_v33 = vpop.eup %2342  ;;  %v608_v34 = vmul.f32 %v2763_v21, %v607_v26  ;;  %v627_v35 = vmul.f32 %v2780_v28, %v2739_v0  ;;  %vm633_vm14 = vweird.f32 %v2780_v28  ;;  %vm2856_vm5 = vmor %vm622_vm7, %vm623_vm13  ;;  %740 = vst.msk [vmem:[#allocation6 + $0x78] sm:$0xff] %vm684_vm4, %v2461_v20 }
 0x18c   : > { %v2799_v36 = vpop.eup %2344  ;;  %v599_v38 = vmul.f32 0.5, %v598_v29  ;;  %v618_v39 = vmul.f32 %v2771_v25, %v617_v30  ;;  %v637_v40 = vmul.f32 %v2790_v33, %v2742_v3  ;;  %vm643_vm0 = vweird.f32 %v2790_v33  ;;  %vm2875_vm7 = vmor %vm632_vm8, %vm633_vm14  ;;  %v583_v29 = vld [vmem:[%s3999_s2 + $0x18] sm:$0xff]  ;;  %741 = vst.msk [vmem:[#allocation7] sm:$0xff] %vm684_vm4, %v2461_v20 }
 0x18d   : > { %v609_v41 = vmul.f32 0.5, %v608_v34  ;;  %v628_v42 = vmul.f32 %v2780_v28, %v627_v35  ;;  %v647_v44 = vmul.f32 %v2799_v36, %v2747_v5  ;;  %v2818_v48 = vpop.eup %2346  ;;  %vm653_vm2 = vweird.f32 %v2799_v36  ;;  %vm2893_vm8 = vmor %vm642_vm9, %vm643_vm0  ;;  %v700_v30 = vld [vmem:[%s4000_s3 + $0x38] sm:$0xff]  ;;  %742 = vst.msk [vmem:[#allocation7 + $0x8] sm:$0xff] %vm684_vm4, %v2461_v20 }
 0x18e   : > { %v600_v45 = vsub.f32 1.5, %v599_v38  ;;  %v619_v46 = vmul.f32 0.5, %v618_v39  ;;  %v638_v47 = vmul.f32 %v2790_v33, %v637_v40  ;;  %v657_v62 = vmul.f32 %v2818_v48, %v2759_v11  ;;  %v584_v39 = vld [vmem:[%s3999_s2 + $0x20] sm:$0xff]  ;;  %vm2912_vm9 = vmor %vm652_vm10, %vm653_vm2  ;;  %v586_v11 = vld [vmem:[%s3999_s2 + $0x30] sm:$0xff]  ;;  %743 = vst.msk [vmem:[#allocation7 + $0x10] sm:$0xff] %vm684_vm4, %v2461_v20 }
 0x18f   : > { %v610_v51 = vsub.f32 1.5, %v609_v41  ;;  %v629_v52 = vmul.f32 0.5, %v628_v42  ;;  %v648_v54 = vmul.f32 %v2799_v36, %v647_v44  ;;  %vm663_vm6 = vweird.f32 %v2818_v48  ;;  %v2899_v35 = vpop.eup %2348  ;;  %v585_v44 = vld [vmem:[%s3999_s2 + $0x28] sm:$0xff]  ;;  %744 = vst.msk [vmem:[#allocation7 + $0x18] sm:$0xff] %vm684_vm4, %v2461_v20 }
 0x190   : > { %v601_v58 = vmul.f32 %v2755_v10, %v600_v45  ;;  %v620_v59 = vsub.f32 1.5, %v619_v46  ;;  %v639_v61 = vmul.f32 0.5, %v638_v47  ;;  %v658_v24 = vmul.f32 %v2818_v48, %v657_v62  ;;  %vm2944_vm12 = vmor %vm662_vm15, %vm663_vm6  ;;  %v696_v62 = vld [vmem:[%s4000_s3 + $0x18] sm:$0xff]  ;;  %745 = vst.msk [vmem:[#allocation7 + $0x20] sm:$0xff] %vm684_vm4, %v2461_v20 }
 0x191   : > { %v611_v1 = vmul.f32 %v2763_v21, %v610_v51  ;;  %v630_v2 = vsub.f32 1.5, %v629_v52  ;;  %v649_v4 = vmul.f32 0.5, %v648_v54  ;;  %v667_v45 = vmul.f32 %v2899_v35, %v2786_v31  ;;  %746 = vst.msk [vmem:[#allocation7 + $0x28] sm:$0xff] %vm684_vm4, %v2461_v20 }
 0x192   : > { %v605_v7 = vsel %vm2824_vm1, %v2755_v10, %v601_v58  ;;  %v621_v8 = vmul.f32 %v2771_v25, %v620_v59  ;;  %v640_v22 = vsub.f32 1.5, %v639_v61  ;;  %v659_v41 = vmul.f32 0.5, %v658_v24  ;;  %v694_v58 = vld [vmem:[%s4000_s3 + $0x8] sm:$0xff]  ;;  %747 = vst.msk [vmem:[#allocation7 + $0x30] sm:$0xff] %vm684_vm4, %v2461_v20 }
 0x193   : > { %v676_v10 = vmul.f32 %v605_v7, %v580_v55  ;;  %v615_v26 = vsel %vm2840_vm3, %v2763_v21, %v611_v1  ;;  %v631_v0 = vmul.f32 %v2780_v28, %v630_v2  ;;  %v650_v34 = vsub.f32 1.5, %v649_v4  ;;  %v697_v2 = vld [vmem:[%s4000_s3 + $0x20] sm:$0xff]  ;;  %748 = vst.msk [vmem:[#allocation7 + $0x38] sm:$0xff] %vm684_vm4, %v2461_v20 }
 0x194   : > { %v677_v21 = vmul.f32 %v615_v26, %v581_v63  ;;  %v625_v38 = vsel %vm2856_vm5, %v2771_v25, %v621_v8  ;;  %v641_v3 = vmul.f32 %v2790_v33, %v640_v22  ;;  %v660_v50 = vsub.f32 1.5, %v659_v41  ;;  %749 = vst.msk [vmem:[#allocation7 + $0x40] sm:$0xff] %vm684_vm4, %v2461_v20 }
 0x195   : > { %685 = vst.msk [vmem:[#allocation4] sm:$0xff] %vm684_vm4, %v676_v10  ;;  %v678_v25 = vmul.f32 %v625_v38, %v582_v60  ;;  %v635_v42 = vsel %vm2875_vm7, %v2780_v28, %v631_v0  ;;  %v651_v5 = vmul.f32 %v2799_v36, %v650_v34  ;;  %vm673_vm10 = vweird.f32 %v2899_v35  ;;  %v693_v28 = vld [vmem:[%s4000_s3] sm:$0xff]  ;;  %v698_v60 = vld [vmem:[%s4000_s3 + $0x28] sm:$0xff] }
 0x196   : > { %686 = vst.msk [vmem:[#allocation4 + $0x8] sm:$0xff] %vm684_vm4, %v677_v21  ;;  %v679_v46 = vmul.f32 %v635_v42, %v583_v29  ;;  %v645_v47 = vsel %vm2893_vm8, %v2790_v33, %v641_v3  ;;  %v668_v54 = vmul.f32 %v2899_v35, %v667_v45  ;;  %v701_v55 = vmul.f32 %v676_v10, %v2705_v23  ;;  %vm674_vm13 = vmor %vm672_vm11, %vm673_vm10 }
 0x197   : > { %687 = vst.msk [vmem:[#allocation4 + $0x10] sm:$0xff] %vm684_vm4, %v678_v25  ;;  %v680_v51 = vmul.f32 %v645_v47, %v584_v39  ;;  %v655_v52 = vsel %vm2912_vm9, %v2799_v36, %v651_v5  ;;  %v695_v36 = vld [vmem:[%s4000_s3 + $0x10] sm:$0xff]  ;;  %v661_v59 = vmul.f32 %v2818_v48, %v660_v50  ;;  %v702_v61 = vmul.f32 %v677_v21, %v2707_v27 }
 0x198   : > { %688 = vst.msk [vmem:[#allocation4 + $0x18] sm:$0xff] %vm684_vm4, %v679_v46  ;;  %v681_v53 = vmul.f32 %v655_v52, %v585_v44  ;;  %v703_v23 = vmul.f32 %v678_v25, %v2711_v32  ;;  %v669_v63 = vmul.f32 0.5, %v668_v54  ;;  %v709_v1 = vsub.f32 %v693_v28, %v701_v55 }
 0x199   : > { %689 = vst.msk [vmem:[#allocation4 + $0x20] sm:$0xff] %vm684_vm4, %v680_v51  ;;  %v704_v57 = vmul.f32 %v679_v46, %v2715_v37  ;;  %v705_v4 = vmul.f32 %v680_v51, %v2719_v43  ;;  %v665_v27 = vsel %vm2944_vm12, %v2818_v48, %v661_v59  ;;  %v710_v32 = vsub.f32 %v694_v58, %v702_v61  ;;  %v699_v48 = vld [vmem:[%s4000_s3 + $0x30] sm:$0xff] }
 0x19a   : > { %690 = vst.msk [vmem:[#allocation4 + $0x28] sm:$0xff] %vm684_vm4, %v681_v53  ;;  %v711_v7 = vsub.f32 %v695_v36, %v703_v23  ;;  %v706_v37 = vmul.f32 %v681_v53, %v2723_v49  ;;  %v682_v8 = vmul.f32 %v665_v27, %v586_v11  ;;  %v670_v9 = vsub.f32 1.5, %v669_v63  ;;  %v587_v49 = vld [vmem:[%s3999_s2 + $0x38] sm:$0xff] }
 0x19b   : > { %717 = vst.msk [vmem:[#allocation5] sm:$0xff] %vm684_vm4, %v709_v1  ;;  %v712_v22 = vsub.f32 %v696_v62, %v704_v57  ;;  %v713_v43 = vsub.f32 %v697_v2, %v705_v4  ;;  %vm757_vm14 = vcmask 15360  }
 0x19c   : > { %718 = vst.msk [vmem:[#allocation5 + $0x8] sm:$0xff] %vm684_vm4, %v710_v32  ;;  %v671_v24 = vmul.f32 %v2899_v35, %v670_v9  ;;  %v714_v10 = vsub.f32 %v698_v60, %v706_v37  ;;  %v707_v26 = vmul.f32 %v682_v8, %v2729_v56 }
 0x19d   : > { %691 = vst.msk [vmem:[#allocation4 + $0x30] sm:$0xff] %vm684_vm4, %v682_v8 }
 0x19e   : > { %719 = vst.msk [vmem:[#allocation5 + $0x10] sm:$0xff] %vm684_vm4, %v711_v7  ;;  %v675_v31 = vsel %vm674_vm13, %v2899_v35, %v671_v24  ;;  %v715_v29 = vsub.f32 %v699_v48, %v707_v26 }
 0x19f   : > { %720 = vst.msk [vmem:[#allocation5 + $0x18] sm:$0xff] %vm684_vm4, %v712_v22  ;;  %v683_v0 = vmul.f32 %v675_v31, %v587_v49 }
 0x1a0   : > { %721 = vst.msk [vmem:[#allocation5 + $0x20] sm:$0xff] %vm684_vm4, %v713_v43 }
 0x1a1   : > { %722 = vst.msk [vmem:[#allocation5 + $0x28] sm:$0xff] %vm684_vm4, %v714_v10  ;;  %v708_v56 = vmul.f32 %v683_v0, %v2749_v6  ;;  %v2462_v6 = vmov -inf  }
 0x1a2   : > { %692 = vst.msk [vmem:[#allocation4 + $0x38] sm:$0xff] %vm684_vm4, %v683_v0 }
 0x1a3   : > { %723 = vst.msk [vmem:[#allocation5 + $0x30] sm:$0xff] %vm684_vm4, %v715_v29  ;;  %v716_v34 = vsub.f32 %v700_v30, %v708_v56 }
 0x1a4   : > { %750 = vst.msk [vmem:[#allocation7 + $0x48] sm:$0xff] %vm684_vm4, %v2461_v20 }
 0x1a5   : > { %724 = vst.msk [vmem:[#allocation5 + $0x38] sm:$0xff] %vm684_vm4, %v716_v34 }
 0x1a6   : > { %751 = vst.msk [vmem:[#allocation7 + $0x50] sm:$0xff] %vm684_vm4, %v2461_v20 }
 0x1a7   : > { %752 = vst.msk [vmem:[#allocation7 + $0x58] sm:$0xff] %vm684_vm4, %v2461_v20 }
 0x1a8   : > { %753 = vst.msk [vmem:[#allocation7 + $0x60] sm:$0xff] %vm684_vm4, %v2461_v20 }
 0x1a9   : > { %754 = vst.msk [vmem:[#allocation7 + $0x68] sm:$0xff] %vm684_vm4, %v2461_v20 }
 0x1aa   : > { %755 = vst.msk [vmem:[#allocation7 + $0x70] sm:$0xff] %vm684_vm4, %v2461_v20 }
 0x1ab   : > { %756 = vst.msk [vmem:[#allocation7 + $0x78] sm:$0xff] %vm684_vm4, %v2461_v20  ;;  %v2463_v20 = vmov inf  }
 0x1ac   : > { %758 = vst.msk [vmem:[#allocation8] sm:$0xff] %vm757_vm14, %v2462_v6 }
 0x1ad   : > { %759 = vst.msk [vmem:[#allocation8 + $0x8] sm:$0xff] %vm757_vm14, %v2462_v6 }
 0x1ae   : > { %760 = vst.msk [vmem:[#allocation8 + $0x10] sm:$0xff] %vm757_vm14, %v2462_v6 }
 0x1af   : > { %761 = vst.msk [vmem:[#allocation8 + $0x18] sm:$0xff] %vm757_vm14, %v2462_v6 }
 0x1b0   : > { %762 = vst.msk [vmem:[#allocation8 + $0x20] sm:$0xff] %vm757_vm14, %v2462_v6 }
 0x1b1   : > { %763 = vst.msk [vmem:[#allocation8 + $0x28] sm:$0xff] %vm757_vm14, %v2462_v6 }
 0x1b2   : > { %764 = vst.msk [vmem:[#allocation8 + $0x30] sm:$0xff] %vm757_vm14, %v2462_v6 }
 0x1b3   : > { %765 = vst.msk [vmem:[#allocation8 + $0x38] sm:$0xff] %vm757_vm14, %v2462_v6 }
 0x1b4   : > { %766 = vst.msk [vmem:[#allocation8 + $0x40] sm:$0xff] %vm757_vm14, %v2462_v6 }
 0x1b5   : > { %767 = vst.msk [vmem:[#allocation8 + $0x48] sm:$0xff] %vm757_vm14, %v2462_v6 }
 0x1b6   : > { %768 = vst.msk [vmem:[#allocation8 + $0x50] sm:$0xff] %vm757_vm14, %v2462_v6 }
 0x1b7   : > { %769 = vst.msk [vmem:[#allocation8 + $0x58] sm:$0xff] %vm757_vm14, %v2462_v6 }
 0x1b8   : > { %770 = vst.msk [vmem:[#allocation8 + $0x60] sm:$0xff] %vm757_vm14, %v2462_v6 }
 0x1b9   : > { %771 = vst.msk [vmem:[#allocation8 + $0x68] sm:$0xff] %vm757_vm14, %v2462_v6 }
 0x1ba   : > { %772 = vst.msk [vmem:[#allocation8 + $0x70] sm:$0xff] %vm757_vm14, %v2462_v6 }
 0x1bb   : > { %773 = vst.msk [vmem:[#allocation8 + $0x78] sm:$0xff] %vm757_vm14, %v2462_v6 }
 0x1bc   : > { %774 = vst.msk [vmem:[#allocation9] sm:$0xff] %vm757_vm14, %v2463_v20 }
 0x1bd   : > { %775 = vst.msk [vmem:[#allocation9 + $0x8] sm:$0xff] %vm757_vm14, %v2463_v20 }
 0x1be   : > { %776 = vst.msk [vmem:[#allocation9 + $0x10] sm:$0xff] %vm757_vm14, %v2463_v20 }
 0x1bf   : > { %777 = vst.msk [vmem:[#allocation9 + $0x18] sm:$0xff] %vm757_vm14, %v2463_v20 }
 0x1c0   : > { %778 = vst.msk [vmem:[#allocation9 + $0x20] sm:$0xff] %vm757_vm14, %v2463_v20 }
 0x1c1   : > { %779 = vst.msk [vmem:[#allocation9 + $0x28] sm:$0xff] %vm757_vm14, %v2463_v20 }
 0x1c2   : > { %780 = vst.msk [vmem:[#allocation9 + $0x30] sm:$0xff] %vm757_vm14, %v2463_v20 }
 0x1c3   : > { %781 = vst.msk [vmem:[#allocation9 + $0x38] sm:$0xff] %vm757_vm14, %v2463_v20 }
 0x1c4   : > { %782 = vst.msk [vmem:[#allocation9 + $0x40] sm:$0xff] %vm757_vm14, %v2463_v20 }
 0x1c5   : > { %783 = vst.msk [vmem:[#allocation9 + $0x48] sm:$0xff] %vm757_vm14, %v2463_v20 }
 0x1c6   : > { %784 = vst.msk [vmem:[#allocation9 + $0x50] sm:$0xff] %vm757_vm14, %v2463_v20 }
 0x1c7   : > { %785 = vst.msk [vmem:[#allocation9 + $0x58] sm:$0xff] %vm757_vm14, %v2463_v20 }
 0x1c8   : > { %786 = vst.msk [vmem:[#allocation9 + $0x60] sm:$0xff] %vm757_vm14, %v2463_v20 }
 0x1c9   : > { %787 = vst.msk [vmem:[#allocation9 + $0x68] sm:$0xff] %vm757_vm14, %v2463_v20 }
 0x1ca   : > { %788 = vst.msk [vmem:[#allocation9 + $0x70] sm:$0xff] %vm757_vm14, %v2463_v20 }
 0x1cb   : > { %789 = vst.msk [vmem:[#allocation9 + $0x78] sm:$0xff] %vm757_vm14, %v2463_v20 }
 0x1cc PF: > { %v794_v35 = vld [vmem:[#allocation4 + $0x20] sm:$0xff]  ;;  %v792_v21 = vld [vmem:[#allocation4 + $0x10] sm:$0xff]  ;;  %v2464_v39 = vmov 0   ;;  %v795_v3 = vld [vmem:[#allocation4 + $0x28] sm:$0xff]  ;;  %vm926_vm4 = vcmask 523264   ;;  %vm1333_vm0 = vcmask 15360  }
 0x1cd   : > { %v790_v38 = vld [vmem:[#allocation4] sm:$0xff]  ;;  %2352 = vset.pattern.permute.xlu2 %v2464_v39  ;;  %2351 = vset.pattern.permute.xlu1 %v2464_v39  ;;  %v793_v40 = vld [vmem:[#allocation4 + $0x18] sm:$0xff]  ;;  %v791_v41 = vld [vmem:[#allocation4 + $0x8] sm:$0xff]  ;;  %vm1104_vm1 = vcmask 7168  }
 0x1ce   : > { %2350 = vset.pattern.permute.xlu0 %v2464_v39  ;;  %820 = vperm.xlu2 %2352, %v794_v35   ;;  %v853_v25 = vld [vmem:[#allocation5 + $0x38] sm:$0xff]  ;;  %v796_v44 = vld [vmem:[#allocation4 + $0x30] sm:$0xff]  ;;  %v850_v5 = vld [vmem:[#allocation5 + $0x20] sm:$0xff] }
 0x1cf   : > { %810 = vperm.xlu1 %2351, %v792_v21   ;;  %800 = vperm.xlu0 %2350, %v790_v38   ;;  %v797_v42 = vld [vmem:[#allocation4 + $0x38] sm:$0xff]  ;;  %v851_v45 = vld [vmem:[#allocation5 + $0x28] sm:$0xff]  ;;  %v852_v46 = vld [vmem:[#allocation5 + $0x30] sm:$0xff] }
 0x1d0   : > { %v847_v47 = vld [vmem:[#allocation5 + $0x8] sm:$0xff]  ;;  %v848_v50 = vld [vmem:[#allocation5 + $0x10] sm:$0xff]  ;;  %v849_v28 = vld [vmem:[#allocation5 + $0x18] sm:$0xff] }
 0x1d1   : > { %v846_v51 = vld [vmem:[#allocation5] sm:$0xff]  ;;  %v911_v34 = vld [vmem:[%s4001_s4 + $0x8] sm:$0xff]  ;;  %v912_v21 = vld [vmem:[%s4001_s4 + $0x10] sm:$0xff] }
 0x1d2   : > { %v910_v0 = vld [vmem:[%s4001_s4] sm:$0xff]  ;;  %v915_v6 = vld [vmem:[%s4001_s4 + $0x28] sm:$0xff]  ;;  %v916_v38 = vld [vmem:[%s4001_s4 + $0x30] sm:$0xff] }
 0x1d3   : > { %v918_v30 = vld [vmem:[%s4001_s4 + $0x40] sm:$0xff]  ;;  %v919_v20 = vld [vmem:[%s4001_s4 + $0x48] sm:$0xff]  ;;  %v920_v39 = vld [vmem:[%s4001_s4 + $0x50] sm:$0xff] }
 0x1d4   : > { %v922_v56 = vld [vmem:[%s4001_s4 + $0x60] sm:$0xff]  ;;  %v923_v35 = vld [vmem:[%s4001_s4 + $0x68] sm:$0xff] }
 0x1d6   : > { %825 = vperm.xlu2 %2352, %v795_v3   ;;  %v924_v3 = vld [vmem:[%s4001_s4 + $0x70] sm:$0xff] }
 0x1d7   : > { %815 = vperm.xlu1 %2351, %v793_v40   ;;  %805 = vperm.xlu0 %2350, %v791_v41   ;;  %v913_v40 = vld [vmem:[%s4001_s4 + $0x18] sm:$0xff] }
 0x1d8   : > { %v917_v41 = vld [vmem:[%s4001_s4 + $0x38] sm:$0xff] }
 0x1de   : > { %891 = vperm.xlu2 %2352, %v853_v25   ;;  %v921_v25 = vld [vmem:[%s4001_s4 + $0x58] sm:$0xff] }
 0x1df   : > { %835 = vperm.xlu1 %2351, %v797_v42   ;;  %830 = vperm.xlu0 %2350, %v796_v44   ;;  %v925_v42 = vld [vmem:[%s4001_s4 + $0x78] sm:$0xff] }
 0x1e6   : > { %876 = vperm.xlu2 %2352, %v850_v5  }
 0x1e7   : > { %881 = vperm.xlu1 %2351, %v851_v45   ;;  %886 = vperm.xlu0 %2350, %v852_v46  }
 0x1ee   : > { %861 = vperm.xlu2 %2352, %v847_v47  }
 0x1ef   : > { %866 = vperm.xlu1 %2351, %v848_v50   ;;  %871 = vperm.xlu0 %2350, %v849_v28  }
 0x1f7   : > { %856 = vperm.xlu0 %2350, %v846_v51  }
 0x228   : > { %v821_v52 = vpop.permute.xlu2 %820 }
 0x229   : > { %v842_v63 = vmul.f32 %v821_v52, %v2631_v14 }
 0x230   : > { %v826_v55 = vpop.permute.xlu2 %825 }
 0x231   : > { %v843_v1 = vmul.f32 %v826_v55, %v2639_v18 }
 0x238   : > { %v892_v53 = vpop.permute.xlu2 %891 }
 0x240   : > { %v877_v57 = vpop.permute.xlu2 %876 }
 0x241   : > { %v811_v33 = vpop.permute.xlu1 %810  ;;  %v801_v54 = vpop.permute.xlu0 %800  ;;  %v898_v60 = vadd.f32 %v877_v57, %v842_v63  ;;  %v1281_v57 = vlaneseq }
 0x242   : > { %v840_v18 = vmul.f32 %v811_v33, %v2629_v13 }
 0x243   : > { %v906_v14 = vmax.f32 %v898_v60, 0.0  ;;  %v1040_v60 = vld [vmem:[#allocation6] sm:$0xff] }
 0x248   : > { %v862_v49 = vpop.permute.xlu2 %861 }
 0x249   : > { %v816_v58 = vpop.permute.xlu1 %815  ;;  %v806_v36 = vpop.permute.xlu0 %805 }
 0x24a   : > { %v839_v8 = vmul.f32 %v806_v36, %v2635_v16  ;;  %v838_v16 = vmul.f32 %v801_v54, %v2627_v12  ;;  %v914_v12 = vld [vmem:[%s4001_s4 + $0x20] sm:$0xff] }
 0x24c   : > { %v895_v24 = vadd.f32 %v862_v49, %v839_v8 }
 0x251   : > { %v836_v11 = vpop.permute.xlu1 %835  ;;  %v831_v59 = vpop.permute.xlu0 %830 }
 0x252   : > { %v845_v61 = vmul.f32 %v836_v11, %v2641_v19  ;;  %v844_v2 = vmul.f32 %v831_v59, %v2633_v15  ;;  %v841_v15 = vmul.f32 %v816_v58, %v2637_v17  ;;  %v903_v17 = vmax.f32 %v895_v24, 0.0 }
 0x254   : > { %v901_v23 = vadd.f32 %v892_v53, %v845_v61 }
 0x256   : > { %v909_v62 = vmax.f32 %v901_v23, 0.0 }
 0x258   : > { %983 = vmatpush.msra.mxu0 %v909_v62  ;;  %2232 = vmatpush.msra.mxu1 %v909_v62 }
 0x259   : > { %2233 = vmatpush.msra.mxu2 %v909_v62  ;;  %2234 = vmatpush.msra.mxu3 %v909_v62  ;;  %v882_v4 = vpop.permute.xlu1 %881  ;;  %v887_v27 = vpop.permute.xlu0 %886 }
 0x25a   : > { %v899_v32 = vadd.f32 %v882_v4, %v843_v1  ;;  %v900_v7 = vadd.f32 %v887_v27, %v844_v2  ;;  %v1282_v4 = vand.u32 127, %v1281_v57  ;;  %v1283_v27 = vstv %s2438_s27 }
 0x25c   : > { %v908_v37 = vmax.f32 %v900_v7, 0.0  ;;  %v907_v19 = vmax.f32 %v899_v32, 0.0  ;;  %v1289_v32 = vld [vmem:[#allocation8 + $0x20] sm:$0xff]  ;;  %vm3158_vm15 = vcmp.eq.s32.totalorder %v1282_v4, %v1283_v27 }
 0x25d   : > { %v1285_v7 = vld [vmem:[#allocation8] sm:$0xff] }
 0x25e   : > { %984 = vmatpush.msra.mxu0 %v908_v37  ;;  %2235 = vmatpush.msra.mxu1 %v908_v37 }
 0x25f   : > { %2236 = vmatpush.msra.mxu2 %v908_v37  ;;  %2237 = vmatpush.msra.mxu3 %v908_v37 }
 0x260   : > { %985 = vmatpush.msra.mxu0 %v907_v19  ;;  %2238 = vmatpush.msra.mxu1 %v907_v19 }
 0x261   : > { %2239 = vmatpush.msra.mxu2 %v907_v19  ;;  %2240 = vmatpush.msra.mxu3 %v907_v19  ;;  %v867_v9 = vpop.permute.xlu1 %866  ;;  %v872_v22 = vpop.permute.xlu0 %871 }
 0x262   : > { %v896_v43 = vadd.f32 %v867_v9, %v840_v18  ;;  %v897_v48 = vadd.f32 %v872_v22, %v841_v15  ;;  %986 = vmatpush.msra.mxu0 %v906_v14  ;;  %2241 = vmatpush.msra.mxu1 %v906_v14 }
 0x263   : > { %2242 = vmatpush.msra.mxu2 %v906_v14  ;;  %2243 = vmatpush.msra.mxu3 %v906_v14 }
 0x264   : > { %v905_v10 = vmax.f32 %v897_v48, 0.0  ;;  %v904_v13 = vmax.f32 %v896_v43, 0.0 }
 0x266   : > { %987 = vmatpush.msra.mxu0 %v905_v10  ;;  %2244 = vmatpush.msra.mxu1 %v905_v10 }
 0x267   : > { %2245 = vmatpush.msra.mxu2 %v905_v10  ;;  %2246 = vmatpush.msra.mxu3 %v905_v10  ;;  %v1350_v10 = vld [vmem:[#allocation9] sm:$0xff] }
 0x268   : > { %988 = vmatpush.msra.mxu0 %v904_v13  ;;  %2247 = vmatpush.msra.mxu1 %v904_v13 }
 0x269   : > { %2248 = vmatpush.msra.mxu2 %v904_v13  ;;  %2249 = vmatpush.msra.mxu3 %v904_v13  ;;  %v857_v26 = vpop.permute.xlu0 %856  ;;  %v1125_v13 = vld [vmem:[#allocation7 + $0x20] sm:$0xff] }
 0x26a   : > { %v894_v31 = vadd.f32 %v857_v26, %v838_v16  ;;  %989 = vmatpush.msra.mxu0 %v903_v17  ;;  %2250 = vmatpush.msra.mxu1 %v903_v17  ;;  %v1044_v16 = vld [vmem:[#allocation6 + $0x20] sm:$0xff] }
 0x26b   : > { %2251 = vmatpush.msra.mxu2 %v903_v17  ;;  %2252 = vmatpush.msra.mxu3 %v903_v17 }
 0x26c   : > { %v902_v29 = vmax.f32 %v894_v31, 0.0 }
 0x26e   : > { %990 = vmatpush.msra.mxu0 %v902_v29  ;;  %2253 = vmatpush.msra.mxu1 %v902_v29 }
 0x26f   : > { %2254 = vmatpush.msra.mxu2 %v902_v29  ;;  %2255 = vmatpush.msra.mxu3 %v902_v29 }
 0x270   : > { %2208 = vmatmul.msk.f32.vlgmr.msra.gmra.mxu0 %vm926_vm4, %v910_v0  ;;  %2212 = vmatmul.msk.f32.vlgmr.msra.gmra.mxu1 %vm926_vm4, %v914_v12 }
 0x271   : > { %2216 = vmatmul.msk.f32.vlgmr.msra.gmra.mxu2 %vm926_vm4, %v918_v30  ;;  %2220 = vmatmul.msk.f32.vlgmr.msra.gmra.mxu3 %vm926_vm4, %v922_v56  ;;  %v1052_v56 = vld [vmem:[#allocation6 + $0x60] sm:$0xff] }
 0x278   : > { %2209 = vmatmul.msk.f32.gmra.mxu0 %vm926_vm4, %v911_v34  ;;  %2213 = vmatmul.msk.f32.gmra.mxu1 %vm926_vm4, %v915_v6  ;;  %v1048_v34 = vld [vmem:[#allocation6 + $0x40] sm:$0xff] }
 0x279   : > { %2217 = vmatmul.msk.f32.gmra.mxu2 %vm926_vm4, %v919_v20  ;;  %2221 = vmatmul.msk.f32.gmra.mxu3 %vm926_vm4, %v923_v35  ;;  %v1354_v6 = vld [vmem:[#allocation9 + $0x20] sm:$0xff] }
 0x280   : > { %2210 = vmatmul.msk.f32.gmra.mxu0 %vm926_vm4, %v912_v21  ;;  %2214 = vmatmul.msk.f32.gmra.mxu1 %vm926_vm4, %v916_v38 }
 0x281   : > { %2218 = vmatmul.msk.f32.gmra.mxu2 %vm926_vm4, %v920_v39  ;;  %2222 = vmatmul.msk.f32.gmra.mxu3 %vm926_vm4, %v924_v3 }
 0x288   : > { %2211 = vmatmul.msk.f32.gmra.mxu0 %vm926_vm4, %v913_v40  ;;  %2215 = vmatmul.msk.f32.gmra.mxu1 %vm926_vm4, %v917_v41 }
 0x289   : > { %2219 = vmatmul.msk.f32.gmra.mxu2 %vm926_vm4, %v921_v25  ;;  %2223 = vmatmul.msk.f32.gmra.mxu3 %vm926_vm4, %v925_v42  ;;  %v1362_v42 = vld [vmem:[#allocation9 + $0x60] sm:$0xff] }
 0x2ed   : > { %v992_v44 = vpop.f32.mrf.mxu0  ;;  %v1004_v5 = vpop.f32.mrf.mxu1 }
 0x2ee   : > { %1225 = vmax.xlane.f32.xlu0 %v1004_v5  ;;  %1217 = vmax.xlane.f32.xlu2 %v992_v44  ;;  %v1141_v45 = vmul.f32 %v1004_v5, %v1004_v5  ;;  %v1137_v50 = vmul.f32 %v992_v44, %v992_v44 }
 0x2ef   : > { %1056 = vadd.xlane.f32.xlu1 %v992_v44 }
 0x2f4   : > { %v1016_v46 = vpop.f32.mrf.mxu2  ;;  %v1028_v47 = vpop.f32.mrf.mxu3 }
 0x2f5   : > { %v1145_v28 = vmul.f32 %v1016_v46, %v1016_v46  ;;  %v995_v51 = vpop.f32.mrf.mxu0  ;;  %v1149_v52 = vmul.f32 %v1028_v47, %v1028_v47  ;;  %v1007_v33 = vpop.f32.mrf.mxu1 }
 0x2f6   : > { %1249 = vmin.xlane.f32.xlu0 %v992_v44  ;;  %1161 = vadd.xlane.f32.xlu2 %v1141_v45  ;;  %v1142_v54 = vmul.f32 %v1007_v33, %v1007_v33  ;;  %v1138_v36 = vmul.f32 %v995_v51, %v995_v51  ;;  %v1297_v44 = vld [vmem:[#allocation8 + $0x60] sm:$0xff] }
 0x2f7   : > { %1064 = vadd.xlane.f32.xlu1 %v1004_v5 }
 0x2fc   : > { %v1019_v55 = vpop.f32.mrf.mxu2  ;;  %v3147_v58 = vpop.f32.mrf.mxu3 }
 0x2fd   : > { %v1146_v53 = vmul.f32 %v1019_v55, %v1019_v55  ;;  %v998_v11 = vpop.f32.mrf.mxu0  ;;  %v1150_v59 = vmul.f32 %v3147_v58, %v3147_v58  ;;  %v1010_v61 = vpop.f32.mrf.mxu1 }
 0x2fe   : > { %1080 = vadd.xlane.f32.xlu0 %v1028_v47  ;;  %1072 = vadd.xlane.f32.xlu2 %v1016_v46  ;;  %v1143_v23 = vmul.f32 %v1010_v61, %v1010_v61  ;;  %v1139_v1 = vmul.f32 %v998_v11, %v998_v11 }
 0x2ff   : > { %1257 = vmin.xlane.f32.xlu1 %v1004_v5  ;;  %v1121_v5 = vld [vmem:[#allocation7] sm:$0xff] }
 0x304   : > { %v1022_v62 = vpop.f32.mrf.mxu2  ;;  %v3153_v63 = vpop.f32.mrf.mxu3 }
 0x305   : > { %v1001_v2 = vpop.f32.mrf.mxu0  ;;  %v1151_v22 = vmul.f32 %v3153_v63, %v3153_v63  ;;  %v1013_v49 = vpop.f32.mrf.mxu1  ;;  %v1147_v24 = vmul.f32 %v1022_v62, %v1022_v62 }
 0x306   : > { %1273 = vmin.xlane.f32.xlu0 %v1028_v47  ;;  %1241 = vmax.xlane.f32.xlu2 %v1028_v47  ;;  %v1144_v40 = vmul.f32 %v1013_v49, %v1013_v49  ;;  %v1140_v25 = vmul.f32 %v1001_v2, %v1001_v2 }
 0x307   : > { %1153 = vadd.xlane.f32.xlu1 %v1137_v50 }
 0x30e   : > { %1169 = vadd.xlane.f32.xlu0 %v1145_v28  ;;  %1265 = vmin.xlane.f32.xlu2 %v1016_v46 }
 0x30f   : > { %1233 = vmax.xlane.f32.xlu1 %v1016_v46 }
 0x316   : > { %1219 = vmax.xlane.f32.xlu0 %v995_v51  ;;  %1058 = vadd.xlane.f32.xlu2 %v995_v51 }
 0x317   : > { %1177 = vadd.xlane.f32.xlu1 %v1149_v52  ;;  %v1025_v52 = vpop.f32.mrf.mxu2 }
 0x318   : > { %v1148_v27 = vmul.f32 %v1025_v52, %v1025_v52 }
 0x31e   : > { %1163 = vadd.xlane.f32.xlu0 %v1142_v54  ;;  %1066 = vadd.xlane.f32.xlu2 %v1007_v33 }
 0x31f   : > { %1227 = vmax.xlane.f32.xlu1 %v1007_v33 }
 0x326   : > { %1074 = vadd.xlane.f32.xlu0 %v1019_v55  ;;  %1259 = vmin.xlane.f32.xlu2 %v1007_v33  ;;  %v1037_v33 = vpop.f32.mrf.mxu3 }
 0x327   : > { %1251 = vmin.xlane.f32.xlu1 %v995_v51 }
 0x32e   : > { %1243 = vmax.xlane.f32.xlu0 %v3147_v58  ;;  %1155 = vadd.xlane.f32.xlu2 %v1138_v36  ;;  %v1129_v36 = vld [vmem:[#allocation7 + $0x40] sm:$0xff] }
 0x32f   : > { %1082 = vadd.xlane.f32.xlu1 %v3147_v58 }
 0x336   : > { %1267 = vmin.xlane.f32.xlu0 %v1019_v55  ;;  %1235 = vmax.xlane.f32.xlu2 %v1019_v55 }
 0x337   : > { %1171 = vadd.xlane.f32.xlu1 %v1146_v53  ;;  %v1358_v53 = vld [vmem:[#allocation9 + $0x40] sm:$0xff] }
 0x33e   : > { %1179 = vadd.xlane.f32.xlu2 %v1150_v59  ;;  %1060 = vadd.xlane.f32.xlu0 %v998_v11 }
 0x33f   : > { %1221 = vmax.xlane.f32.xlu1 %v998_v11 }
 0x346   : > { %1229 = vmax.xlane.f32.xlu2 %v1010_v61  ;;  %1068 = vadd.xlane.f32.xlu0 %v1010_v61 }
 0x347   : > { %1165 = vadd.xlane.f32.xlu1 %v1143_v23 }
 0x34e   : > { %1253 = vmin.xlane.f32.xlu2 %v998_v11  ;;  %1261 = vmin.xlane.f32.xlu0 %v1010_v61  ;;  %v1293_v11 = vld [vmem:[#allocation8 + $0x40] sm:$0xff] }
 0x34f   : > { %1076 = vadd.xlane.f32.xlu1 %v1022_v62 }
 0x356   : > { %1084 = vadd.xlane.f32.xlu2 %v3153_v63  ;;  %1157 = vadd.xlane.f32.xlu0 %v1139_v1 }
 0x357   : > { %1245 = vmax.xlane.f32.xlu1 %v3153_v63 }
 0x35e   : > { %1237 = vmax.xlane.f32.xlu0 %v1022_v62  ;;  %1062 = vadd.xlane.f32.xlu2 %v1001_v2 }
 0x35f   : > { %1269 = vmin.xlane.f32.xlu1 %v1022_v62 }
 0x361   : > { %v1226_v19 = vpop.xlane.xlu0 %1225  ;;  %v1218_v14 = vpop.xlane.xlu2 %1217 }
 0x362   : > { %v1305_v18 = vmax.f32 %v1289_v32, %v1226_v19  ;;  %v1301_v15 = vmax.f32 %v1285_v7, %v1218_v14  ;;  %v1057_v8 = vpop.xlane.xlu1 %1056  ;;  %v1133_v19 = vld [vmem:[#allocation7 + $0x60] sm:$0xff] }
 0x363   : > { %v1088_v9 = vadd.f32 %v1057_v8, %v1040_v60  ;;  %v1041_v60 = vld [vmem:[#allocation6 + $0x8] sm:$0xff] }
 0x364   : > { %v1321_v43 = vsel %vm3158_vm15, %v1305_v18, %v1289_v32  ;;  %v1317_v48 = vsel %vm3158_vm15, %v1301_v15, %v1285_v7  ;;  %v1286_v7 = vld [vmem:[#allocation8 + $0x8] sm:$0xff] }
 0x365   : > { %1338 = vst.msk [vmem:[#allocation8 + $0x20] sm:$0xff] %vm1333_vm0, %v1321_v43 }
 0x366   : > { %1334 = vst.msk [vmem:[#allocation8] sm:$0xff] %vm1333_vm0, %v1317_v48  ;;  %1181 = vadd.xlane.f32.xlu0 %v1151_v22  ;;  %1173 = vadd.xlane.f32.xlu2 %v1147_v24  ;;  %v1126_v48 = vld [vmem:[#allocation7 + $0x28] sm:$0xff] }
 0x367   : > { %1105 = vst.msk [vmem:[#allocation6] sm:$0xff] %vm1104_vm1, %v1088_v9  ;;  %1070 = vadd.xlane.f32.xlu1 %v1013_v49  ;;  %v1290_v24 = vld [vmem:[#allocation8 + $0x28] sm:$0xff] }
 0x369   : > { %v1250_v17 = vpop.xlane.xlu0 %1249  ;;  %v1162_v26 = vpop.xlane.xlu2 %1161 }
 0x36a   : > { %v1366_v31 = vmin.f32 %v1350_v10, %v1250_v17  ;;  %v1189_v29 = vadd.f32 %v1162_v26, %v1125_v13  ;;  %v1065_v0 = vpop.xlane.xlu1 %1064 }
 0x36b   : > { %v1092_v12 = vadd.f32 %v1065_v0, %v1044_v16  ;;  %v1355_v0 = vld [vmem:[#allocation9 + $0x28] sm:$0xff] }
 0x36c   : > { %v1382_v30 = vsel %vm3158_vm15, %v1366_v31, %v1350_v10  ;;  %1205 = vst.msk [vmem:[#allocation7 + $0x20] sm:$0xff] %vm1104_vm1, %v1189_v29 }
 0x36d   : > { %1398 = vst.msk [vmem:[#allocation9] sm:$0xff] %vm1333_vm0, %v1382_v30 }
 0x36e   : > { %1109 = vst.msk [vmem:[#allocation6 + $0x20] sm:$0xff] %vm1104_vm1, %v1092_v12  ;;  %1231 = vmax.xlane.f32.xlu0 %v1013_v49  ;;  %1223 = vmax.xlane.f32.xlu2 %v1001_v2  ;;  %v1351_v12 = vld [vmem:[#allocation9 + $0x8] sm:$0xff] }
 0x36f   : > { %1263 = vmin.xlane.f32.xlu1 %v1013_v49  ;;  %v1045_v49 = vld [vmem:[#allocation6 + $0x28] sm:$0xff] }
 0x371   : > { %v1081_v20 = vpop.xlane.xlu0 %1080  ;;  %v1073_v35 = vpop.xlane.xlu2 %1072 }
 0x372   : > { %v1100_v21 = vadd.f32 %v1081_v20, %v1052_v56  ;;  %v1096_v38 = vadd.f32 %v1073_v35, %v1048_v34  ;;  %v1258_v39 = vpop.xlane.xlu1 %1257 }
 0x373   : > { %v1370_v3 = vmin.f32 %v1354_v6, %v1258_v39  ;;  %v1122_v39 = vld [vmem:[#allocation7 + $0x8] sm:$0xff] }
 0x374   : > { %1117 = vst.msk [vmem:[#allocation6 + $0x60] sm:$0xff] %vm1104_vm1, %v1100_v21 }
 0x375   : > { %1113 = vst.msk [vmem:[#allocation6 + $0x40] sm:$0xff] %vm1104_vm1, %v1096_v38  ;;  %v1386_v41 = vsel %vm3158_vm15, %v1370_v3, %v1354_v6  ;;  %v1053_v3 = vld [vmem:[#allocation6 + $0x68] sm:$0xff] }
 0x376   : > { %1402 = vst.msk [vmem:[#allocation9 + $0x20] sm:$0xff] %vm1333_vm0, %v1386_v41  ;;  %1255 = vmin.xlane.f32.xlu0 %v1001_v2  ;;  %1167 = vadd.xlane.f32.xlu2 %v1144_v40  ;;  %v1152_v2 = vmul.f32 %v1037_v33, %v1037_v33 }
 0x377   : > { %1159 = vadd.xlane.f32.xlu1 %v1140_v25 }
 0x379   : > { %v1274_v45 = vpop.xlane.xlu0 %1273  ;;  %v1242_v46 = vpop.xlane.xlu2 %1241 }
 0x37a   : > { %v1378_v47 = vmin.f32 %v1362_v42, %v1274_v45  ;;  %v1313_v50 = vmax.f32 %v1297_v44, %v1242_v46  ;;  %v1154_v28 = vpop.xlane.xlu1 %1153  ;;  %v1359_v46 = vld [vmem:[#allocation9 + $0x48] sm:$0xff] }
 0x37b   : > { %v1185_v51 = vadd.f32 %v1154_v28, %v1121_v5 }
 0x37c   : > { %v1394_v54 = vsel %vm3158_vm15, %v1378_v47, %v1362_v42  ;;  %v1329_v55 = vsel %vm3158_vm15, %v1313_v50, %v1297_v44  ;;  %v1294_v47 = vld [vmem:[#allocation8 + $0x48] sm:$0xff] }
 0x37d   : > { %1410 = vst.msk [vmem:[#allocation9 + $0x60] sm:$0xff] %vm1333_vm0, %v1394_v54  ;;  %v1130_v50 = vld [vmem:[#allocation7 + $0x48] sm:$0xff] }
 0x37e   : > { %1346 = vst.msk [vmem:[#allocation8 + $0x60] sm:$0xff] %vm1333_vm0, %v1329_v55  ;;  %1086 = vadd.xlane.f32.xlu0 %v1037_v33  ;;  %1078 = vadd.xlane.f32.xlu2 %v1025_v52 }
 0x37f   : > { %1201 = vst.msk [vmem:[#allocation7] sm:$0xff] %vm1104_vm1, %v1185_v51  ;;  %1239 = vmax.xlane.f32.xlu1 %v1025_v52 }
 0x381   : > { %v1170_v59 = vpop.xlane.xlu0 %1169  ;;  %v1266_v61 = vpop.xlane.xlu2 %1265 }
 0x382   : > { %v1193_v23 = vadd.f32 %v1170_v59, %v1129_v36  ;;  %v1374_v62 = vmin.f32 %v1358_v53, %v1266_v61  ;;  %v1234_v1 = vpop.xlane.xlu1 %1233  ;;  %v1042_v59 = vld [vmem:[#allocation6 + $0x10] sm:$0xff] }
 0x383   : > { %v1309_v57 = vmax.f32 %v1293_v11, %v1234_v1  ;;  %v1287_v61 = vld [vmem:[#allocation8 + $0x10] sm:$0xff] }
 0x384   : > { %1209 = vst.msk [vmem:[#allocation7 + $0x40] sm:$0xff] %vm1104_vm1, %v1193_v23  ;;  %v1390_v4 = vsel %vm3158_vm15, %v1374_v62, %v1358_v53 }
 0x385   : > { %1406 = vst.msk [vmem:[#allocation9 + $0x40] sm:$0xff] %vm1333_vm0, %v1390_v4  ;;  %v1325_v32 = vsel %vm3158_vm15, %v1309_v57, %v1293_v11  ;;  %v1134_v11 = vld [vmem:[#allocation7 + $0x68] sm:$0xff] }
 0x386   : > { %1342 = vst.msk [vmem:[#allocation8 + $0x40] sm:$0xff] %vm1333_vm0, %v1325_v32  ;;  %1175 = vadd.xlane.f32.xlu0 %v1148_v27  ;;  %1247 = vmax.xlane.f32.xlu2 %v1037_v33  ;;  %v1291_v32 = vld [vmem:[#allocation8 + $0x30] sm:$0xff] }
 0x387   : > { %1183 = vadd.xlane.f32.xlu1 %v1152_v2 }
 0x389   : > { %v1220_v14 = vpop.xlane.xlu0 %1219  ;;  %v1059_v18 = vpop.xlane.xlu2 %1058 }
 0x38a   : > { %v1178_v15 = vpop.xlane.xlu1 %1177  ;;  %v1302_v8 = vmax.f32 %v1286_v7, %v1220_v14  ;;  %v1089_v9 = vadd.f32 %v1059_v18, %v1041_v60  ;;  %v1127_v60 = vld [vmem:[#allocation7 + $0x30] sm:$0xff] }
 0x38b   : > { %v1197_v22 = vadd.f32 %v1178_v15, %v1133_v19 }
 0x38c   : > { %v1318_v43 = vsel %vm3158_vm15, %v1302_v8, %v1286_v7  ;;  %1106 = vst.msk [vmem:[#allocation6 + $0x8] sm:$0xff] %vm1104_vm1, %v1089_v9  ;;  %v1046_v7 = vld [vmem:[#allocation6 + $0x30] sm:$0xff] }
 0x38d   : > { %1213 = vst.msk [vmem:[#allocation7 + $0x60] sm:$0xff] %vm1104_vm1, %v1197_v22 }
 0x38e   : > { %1335 = vst.msk [vmem:[#allocation8 + $0x8] sm:$0xff] %vm1333_vm0, %v1318_v43  ;;  %1279 = vmin.xlane.f32.xlu0 %v1037_v33  ;;  %1271 = vmin.xlane.f32.xlu2 %v1025_v52  ;;  %v1352_v43 = vld [vmem:[#allocation9 + $0x10] sm:$0xff] }
 0x38f   : > { %1275 = vmin.xlane.f32.xlu1 %v3147_v58  ;;  %v1049_v58 = vld [vmem:[#allocation6 + $0x48] sm:$0xff] }
 0x391   : > { %v1164_v10 = vpop.xlane.xlu0 %1163  ;;  %v1067_v13 = vpop.xlane.xlu2 %1066 }
 0x392   : > { %v1228_v16 = vpop.xlane.xlu1 %1227  ;;  %v1190_v17 = vadd.f32 %v1164_v10, %v1126_v48  ;;  %v1093_v26 = vadd.f32 %v1067_v13, %v1045_v49  ;;  %v1356_v48 = vld [vmem:[#allocation9 + $0x30] sm:$0xff] }
 0x393   : > { %v1306_v31 = vmax.f32 %v1290_v24, %v1228_v16  ;;  %v1050_v49 = vld [vmem:[#allocation6 + $0x50] sm:$0xff] }
 0x394   : > { %1206 = vst.msk [vmem:[#allocation7 + $0x28] sm:$0xff] %vm1104_vm1, %v1190_v17 }
 0x395   : > { %v1322_v29 = vsel %vm3158_vm15, %v1306_v31, %v1290_v24  ;;  %1110 = vst.msk [vmem:[#allocation6 + $0x28] sm:$0xff] %vm1104_vm1, %v1093_v26 }
 0x396   : > { %1339 = vst.msk [vmem:[#allocation8 + $0x28] sm:$0xff] %vm1333_vm0, %v1322_v29  ;;  %1277 = vmin.xlane.f32.xlu2 %v3153_v63  ;;  %v1298_v63 = vld [vmem:[#allocation8 + $0x68] sm:$0xff] }
 0x399   : > { %v1075_v30 = vpop.xlane.xlu0 %1074  ;;  %v1260_v56 = vpop.xlane.xlu2 %1259 }
 0x39a   : > { %v1252_v34 = vpop.xlane.xlu1 %1251  ;;  %v1097_v6 = vadd.f32 %v1075_v30, %v1049_v58  ;;  %v1371_v20 = vmin.f32 %v1355_v0, %v1260_v56  ;;  %v1054_v58 = vld [vmem:[#allocation6 + $0x70] sm:$0xff] }
 0x39b   : > { %v1367_v35 = vmin.f32 %v1351_v12, %v1252_v34 }
 0x39c   : > { %1114 = vst.msk [vmem:[#allocation6 + $0x48] sm:$0xff] %vm1104_vm1, %v1097_v6  ;;  %v1387_v21 = vsel %vm3158_vm15, %v1371_v20, %v1355_v0  ;;  %v1123_v0 = vld [vmem:[#allocation7 + $0x10] sm:$0xff] }
 0x39d   : > { %v1383_v38 = vsel %vm3158_vm15, %v1367_v35, %v1351_v12  ;;  %1403 = vst.msk [vmem:[#allocation9 + $0x28] sm:$0xff] %vm1333_vm0, %v1387_v21  ;;  %v1299_v12 = vld [vmem:[#allocation8 + $0x70] sm:$0xff] }
 0x39e   : > { %1399 = vst.msk [vmem:[#allocation9 + $0x8] sm:$0xff] %vm1333_vm0, %v1383_v38  ;;  %v1295_v38 = vld [vmem:[#allocation8 + $0x50] sm:$0xff] }
 0x3a1   : > { %v1244_v40 = vpop.xlane.xlu0 %1243  ;;  %v1156_v41 = vpop.xlane.xlu2 %1155 }
 0x3a2   : > { %v1083_v25 = vpop.xlane.xlu1 %1082  ;;  %v1314_v42 = vmax.f32 %v1298_v63, %v1244_v40  ;;  %v1186_v44 = vadd.f32 %v1156_v41, %v1122_v39  ;;  %v1360_v39 = vld [vmem:[#allocation9 + $0x50] sm:$0xff] }
 0x3a3   : > { %v1101_v5 = vadd.f32 %v1083_v25, %v1053_v3 }
 0x3a4   : > { %v1330_v45 = vsel %vm3158_vm15, %v1314_v42, %v1298_v63  ;;  %1202 = vst.msk [vmem:[#allocation7 + $0x8] sm:$0xff] %vm1104_vm1, %v1186_v44  ;;  %v1043_v63 = vld [vmem:[#allocation6 + $0x18] sm:$0xff] }
 0x3a5   : > { %1118 = vst.msk [vmem:[#allocation6 + $0x68] sm:$0xff] %vm1104_vm1, %v1101_v5 }
 0x3a6   : > { %1347 = vst.msk [vmem:[#allocation8 + $0x68] sm:$0xff] %vm1333_vm0, %v1330_v45 }
 0x3a9   : > { %v1268_v28 = vpop.xlane.xlu0 %1267  ;;  %v1236_v51 = vpop.xlane.xlu2 %1235 }
 0x3aa   : > { %v1172_v52 = vpop.xlane.xlu1 %1171  ;;  %v1375_v33 = vmin.f32 %v1359_v46, %v1268_v28  ;;  %v1310_v54 = vmax.f32 %v1294_v47, %v1236_v51 }
 0x3ab   : > { %v1194_v55 = vadd.f32 %v1172_v52, %v1130_v50  ;;  %v1047_v50 = vld [vmem:[#allocation6 + $0x38] sm:$0xff] }
 0x3ac   : > { %v1391_v36 = vsel %vm3158_vm15, %v1375_v33, %v1359_v46  ;;  %v1326_v53 = vsel %vm3158_vm15, %v1310_v54, %v1294_v47  ;;  %v1135_v46 = vld [vmem:[#allocation7 + $0x70] sm:$0xff] }
 0x3ad   : > { %1210 = vst.msk [vmem:[#allocation7 + $0x48] sm:$0xff] %vm1104_vm1, %v1194_v55  ;;  %v1131_v47 = vld [vmem:[#allocation7 + $0x50] sm:$0xff] }
 0x3ae   : > { %1407 = vst.msk [vmem:[#allocation9 + $0x48] sm:$0xff] %vm1333_vm0, %v1391_v36  ;;  %v1292_v36 = vld [vmem:[#allocation8 + $0x38] sm:$0xff] }
 0x3af   : > { %1343 = vst.msk [vmem:[#allocation8 + $0x48] sm:$0xff] %vm1333_vm0, %v1326_v53  ;;  %v1288_v53 = vld [vmem:[#allocation8 + $0x18] sm:$0xff] }
 0x3b1   : > { %v1180_v23 = vpop.xlane.xlu2 %1179  ;;  %v1061_v62 = vpop.xlane.xlu0 %1060 }
 0x3b2   : > { %v1198_v1 = vadd.f32 %v1180_v23, %v1134_v11  ;;  %v1222_v57 = vpop.xlane.xlu1 %1221  ;;  %v1090_v2 = vadd.f32 %v1061_v62, %v1042_v59  ;;  %v1357_v11 = vld [vmem:[#allocation9 + $0x38] sm:$0xff] }
 0x3b3   : > { %v1303_v4 = vmax.f32 %v1287_v61, %v1222_v57 }
 0x3b4   : > { %1214 = vst.msk [vmem:[#allocation7 + $0x68] sm:$0xff] %vm1104_vm1, %v1198_v1 }
 0x3b5   : > { %v1319_v27 = vsel %vm3158_vm15, %v1303_v4, %v1287_v61  ;;  %1107 = vst.msk [vmem:[#allocation6 + $0x10] sm:$0xff] %vm1104_vm1, %v1090_v2 }
 0x3b6   : > { %1336 = vst.msk [vmem:[#allocation8 + $0x10] sm:$0xff] %vm1333_vm0, %v1319_v27 }
 0x3b9   : > { %v1230_v19 = vpop.xlane.xlu2 %1229  ;;  %v1069_v14 = vpop.xlane.xlu0 %1068 }
 0x3ba   : > { %v1307_v18 = vmax.f32 %v1291_v32, %v1230_v19  ;;  %v1166_v15 = vpop.xlane.xlu1 %1165  ;;  %v1094_v8 = vadd.f32 %v1069_v14, %v1046_v7  ;;  %v1128_v7 = vld [vmem:[#allocation7 + $0x38] sm:$0xff] }
 0x3bb   : > { %v1191_v9 = vadd.f32 %v1166_v15, %v1127_v60  ;;  %v1124_v60 = vld [vmem:[#allocation7 + $0x18] sm:$0xff] }
 0x3bc   : > { %v1323_v22 = vsel %vm3158_vm15, %v1307_v18, %v1291_v32  ;;  %1111 = vst.msk [vmem:[#allocation6 + $0x30] sm:$0xff] %vm1104_vm1, %v1094_v8  ;;  %v1353_v32 = vld [vmem:[#allocation9 + $0x18] sm:$0xff] }
 0x3bd   : > { %1340 = vst.msk [vmem:[#allocation8 + $0x30] sm:$0xff] %vm1333_vm0, %v1323_v22 }
 0x3be   : > { %1207 = vst.msk [vmem:[#allocation7 + $0x30] sm:$0xff] %vm1104_vm1, %v1191_v9 }
 0x3c1   : > { %v1254_v24 = vpop.xlane.xlu2 %1253  ;;  %v1262_v10 = vpop.xlane.xlu0 %1261 }
 0x3c2   : > { %v1368_v13 = vmin.f32 %v1352_v43, %v1254_v24  ;;  %v1077_v16 = vpop.xlane.xlu1 %1076  ;;  %v1372_v17 = vmin.f32 %v1356_v48, %v1262_v10 }
 0x3c3   : > { %v1098_v26 = vadd.f32 %v1077_v16, %v1050_v49  ;;  %v1296_v49 = vld [vmem:[#allocation8 + $0x58] sm:$0xff] }
 0x3c4   : > { %v1384_v31 = vsel %vm3158_vm15, %v1368_v13, %v1352_v43  ;;  %v1388_v29 = vsel %vm3158_vm15, %v1372_v17, %v1356_v48  ;;  %v1055_v43 = vld [vmem:[#allocation6 + $0x78] sm:$0xff] }
 0x3c5   : > { %1400 = vst.msk [vmem:[#allocation9 + $0x10] sm:$0xff] %vm1333_vm0, %v1384_v31  ;;  %v1051_v48 = vld [vmem:[#allocation6 + $0x58] sm:$0xff] }
 0x3c6   : > { %1115 = vst.msk [vmem:[#allocation6 + $0x50] sm:$0xff] %vm1104_vm1, %v1098_v26 }
 0x3c7   : > { %1404 = vst.msk [vmem:[#allocation9 + $0x30] sm:$0xff] %vm1333_vm0, %v1388_v29  ;;  %v1132_v29 = vld [vmem:[#allocation7 + $0x58] sm:$0xff] }
 0x3c9   : > { %v1085_v30 = vpop.xlane.xlu2 %1084  ;;  %v1158_v56 = vpop.xlane.xlu0 %1157 }
 0x3ca   : > { %v1102_v34 = vadd.f32 %v1085_v30, %v1054_v58  ;;  %v1246_v6 = vpop.xlane.xlu1 %1245  ;;  %v1187_v20 = vadd.f32 %v1158_v56, %v1123_v0  ;;  %v1300_v58 = vld [vmem:[#allocation8 + $0x78] sm:$0xff] }
 0x3cb   : > { %v1315_v35 = vmax.f32 %v1299_v12, %v1246_v6  ;;  %v1136_v0 = vld [vmem:[#allocation7 + $0x78] sm:$0xff] }
 0x3cc   : > { %1119 = vst.msk [vmem:[#allocation6 + $0x70] sm:$0xff] %vm1104_vm1, %v1102_v34 }
 0x3cd   : > { %v1331_v21 = vsel %vm3158_vm15, %v1315_v35, %v1299_v12  ;;  %1203 = vst.msk [vmem:[#allocation7 + $0x10] sm:$0xff] %vm1104_vm1, %v1187_v20 }
 0x3ce   : > { %1348 = vst.msk [vmem:[#allocation8 + $0x70] sm:$0xff] %vm1333_vm0, %v1331_v21  ;;  %v1365_v21 = vld [vmem:[#allocation9 + $0x78] sm:$0xff] }
 0x3d1   : > { %v1238_v3 = vpop.xlane.xlu0 %1237  ;;  %v1063_v40 = vpop.xlane.xlu2 %1062 }
 0x3d2   : > { %v1270_v41 = vpop.xlane.xlu1 %1269  ;;  %v1311_v25 = vmax.f32 %v1295_v38, %v1238_v3  ;;  %v1091_v42 = vadd.f32 %v1063_v40, %v1043_v63  ;;  %v1363_v63 = vld [vmem:[#allocation9 + $0x68] sm:$0xff] }
 0x3d3   : > { %v1376_v44 = vmin.f32 %v1360_v39, %v1270_v41 }
 0x3d4   : > { %v1327_v5 = vsel %vm3158_vm15, %v1311_v25, %v1295_v38  ;;  %1108 = vst.msk [vmem:[#allocation6 + $0x18] sm:$0xff] %vm1104_vm1, %v1091_v42  ;;  %v1361_v38 = vld [vmem:[#allocation9 + $0x58] sm:$0xff] }
 0x3d5   : > { %v1392_v45 = vsel %vm3158_vm15, %v1376_v44, %v1360_v39  ;;  %1344 = vst.msk [vmem:[#allocation8 + $0x50] sm:$0xff] %vm1333_vm0, %v1327_v5 }
 0x3d6   : > { %1408 = vst.msk [vmem:[#allocation9 + $0x50] sm:$0xff] %vm1333_vm0, %v1392_v45 }
 0x3d9   : > { %v1182_v28 = vpop.xlane.xlu0 %1181  ;;  %v1174_v51 = vpop.xlane.xlu2 %1173 }
 0x3da   : > { %v1071_v52 = vpop.xlane.xlu1 %1070  ;;  %v1199_v33 = vadd.f32 %v1182_v28, %v1135_v46  ;;  %v1195_v54 = vadd.f32 %v1174_v51, %v1131_v47  ;;  %v1364_v46 = vld [vmem:[#allocation9 + $0x70] sm:$0xff] }
 0x3db   : > { %v1095_v55 = vadd.f32 %v1071_v52, %v1047_v50 }
 0x3dc   : > { %1215 = vst.msk [vmem:[#allocation7 + $0x70] sm:$0xff] %vm1104_vm1, %v1199_v33 }
 0x3dd   : > { %1112 = vst.msk [vmem:[#allocation6 + $0x38] sm:$0xff] %vm1104_vm1, %v1095_v55 }
 0x3de   : > { %1211 = vst.msk [vmem:[#allocation7 + $0x50] sm:$0xff] %vm1104_vm1, %v1195_v54 }
 0x3e1   : > { %v1232_v59 = vpop.xlane.xlu0 %1231  ;;  %v1224_v61 = vpop.xlane.xlu2 %1223 }
 0x3e2   : > { %v1264_v23 = vpop.xlane.xlu1 %1263  ;;  %v1308_v62 = vmax.f32 %v1292_v36, %v1232_v59  ;;  %v1304_v1 = vmax.f32 %v1288_v53, %v1224_v61 }
 0x3e3   : > { %v1373_v57 = vmin.f32 %v1357_v11, %v1264_v23 }
 0x3e4   : > { %v1324_v2 = vsel %vm3158_vm15, %v1308_v62, %v1292_v36  ;;  %v1320_v4 = vsel %vm3158_vm15, %v1304_v1, %v1288_v53 }
 0x3e5   : > { %v1389_v27 = vsel %vm3158_vm15, %v1373_v57, %v1357_v11  ;;  %1341 = vst.msk [vmem:[#allocation8 + $0x38] sm:$0xff] %vm1333_vm0, %v1324_v2 }
 0x3e6   : > { %1405 = vst.msk [vmem:[#allocation9 + $0x38] sm:$0xff] %vm1333_vm0, %v1389_v27 }
 0x3e7   : > { %1337 = vst.msk [vmem:[#allocation8 + $0x18] sm:$0xff] %vm1333_vm0, %v1320_v4 }
 0x3e9   : > { %v1256_v19 = vpop.xlane.xlu0 %1255  ;;  %v1168_v14 = vpop.xlane.xlu2 %1167 }
 0x3ea   : > { %v1369_v18 = vmin.f32 %v1353_v32, %v1256_v19  ;;  %v1192_v15 = vadd.f32 %v1168_v14, %v1128_v7  ;;  %v1160_v8 = vpop.xlane.xlu1 %1159 }
 0x3eb   : > { %v1188_v9 = vadd.f32 %v1160_v8, %v1124_v60 }
 0x3ec   : > { %v1385_v22 = vsel %vm3158_vm15, %v1369_v18, %v1353_v32  ;;  %1208 = vst.msk [vmem:[#allocation7 + $0x38] sm:$0xff] %vm1104_vm1, %v1192_v15 }
 0x3ed   : > { %1401 = vst.msk [vmem:[#allocation9 + $0x18] sm:$0xff] %vm1333_vm0, %v1385_v22 }
 0x3ee   : > { %1204 = vst.msk [vmem:[#allocation7 + $0x18] sm:$0xff] %vm1104_vm1, %v1188_v9 }
 0x3f1   : > { %v1087_v24 = vpop.xlane.xlu0 %1086  ;;  %v1079_v10 = vpop.xlane.xlu2 %1078 }
 0x3f2   : > { %v1103_v13 = vadd.f32 %v1087_v24, %v1055_v43  ;;  %v1099_v16 = vadd.f32 %v1079_v10, %v1051_v48  ;;  %v1240_v17 = vpop.xlane.xlu1 %1239 }
 0x3f3   : > { %v1312_v26 = vmax.f32 %v1296_v49, %v1240_v17 }
 0x3f4   : > { %1120 = vst.msk [vmem:[#allocation6 + $0x78] sm:$0xff] %vm1104_vm1, %v1103_v13 }
 0x3f5   : > { %1116 = vst.msk [vmem:[#allocation6 + $0x58] sm:$0xff] %vm1104_vm1, %v1099_v16  ;;  %v1328_v31 = vsel %vm3158_vm15, %v1312_v26, %v1296_v49 }
 0x3f6   : > { %1345 = vst.msk [vmem:[#allocation8 + $0x58] sm:$0xff] %vm1333_vm0, %v1328_v31 }
 0x3f9   : > { %v1176_v12 = vpop.xlane.xlu0 %1175  ;;  %v1248_v30 = vpop.xlane.xlu2 %1247 }
 0x3fa   : > { %v1196_v56 = vadd.f32 %v1176_v12, %v1132_v29  ;;  %v1316_v34 = vmax.f32 %v1300_v58, %v1248_v30  ;;  %v1184_v6 = vpop.xlane.xlu1 %1183 }
 0x3fb   : > { %v1200_v20 = vadd.f32 %v1184_v6, %v1136_v0 }
 0x3fc   : > { %1212 = vst.msk [vmem:[#allocation7 + $0x58] sm:$0xff] %vm1104_vm1, %v1196_v56  ;;  %v1332_v35 = vsel %vm3158_vm15, %v1316_v34, %v1300_v58 }
 0x3fd   : > { %1349 = vst.msk [vmem:[#allocation8 + $0x78] sm:$0xff] %vm1333_vm0, %v1332_v35 }
 0x3fe   : > { %1216 = vst.msk [vmem:[#allocation7 + $0x78] sm:$0xff] %vm1104_vm1, %v1200_v20 }
 0x401   : > { %v1280_v39 = vpop.xlane.xlu0 %1279  ;;  %v1272_v3 = vpop.xlane.xlu2 %1271 }
 0x402   : > { %v1381_v40 = vmin.f32 %v1365_v21, %v1280_v39  ;;  %v1377_v41 = vmin.f32 %v1361_v38, %v1272_v3  ;;  %v1276_v25 = vpop.xlane.xlu1 %1275 }
 0x403   : > { %v1379_v42 = vmin.f32 %v1363_v63, %v1276_v25 }
 0x404   : > { %v1397_v44 = vsel %vm3158_vm15, %v1381_v40, %v1365_v21  ;;  %v1393_v5 = vsel %vm3158_vm15, %v1377_v41, %v1361_v38 }
 0x405   : > { %1413 = vst.msk [vmem:[#allocation9 + $0x78] sm:$0xff] %vm1333_vm0, %v1397_v44  ;;  %v1395_v45 = vsel %vm3158_vm15, %v1379_v42, %v1363_v63 }
 0x406   : > { %1409 = vst.msk [vmem:[#allocation9 + $0x58] sm:$0xff] %vm1333_vm0, %v1393_v5 }
 0x407   : > { %1411 = vst.msk [vmem:[#allocation9 + $0x68] sm:$0xff] %vm1333_vm0, %v1395_v45 }
 0x409   : > { %v1278_v47 = vpop.xlane.xlu2 %1277  ;;  %1415 = sbr.rel (%p2597_p2) target bundleno = 1321 (0x529), region = 106 }
 0x40a   : > { %v1380_v50 = vmin.f32 %v1364_v46, %v1278_v47 }
 0x40c   : > { %v1396_v28 = vsel %vm3158_vm15, %v1380_v50, %v1364_v46 }
 0x40d   : > { %1412 = vst.msk [vmem:[#allocation9 + $0x70] sm:$0xff] %vm1333_vm0, %v1396_v28 }
 0x40e   : > { %v1420_v51 = vld [vmem:[#allocation6 + $0x20] sm:$0xff]  ;;  %v2465_v33 = vmov 0   ;;  %v1418_v36 = vld [vmem:[#allocation6 + $0x10] sm:$0xff]  ;;  %v1421_v57 = vld [vmem:[#allocation6 + $0x28] sm:$0xff] }
 0x40f   : > { %v1452_v52 = vld [vmem:[#allocation7 + $0x20] sm:$0xff]  ;;  %2355 = vset.pattern.permute.xlu2 %v2465_v33  ;;  %2354 = vset.pattern.permute.xlu1 %v2465_v33  ;;  %v3298_v54 = vmul.f32 0.0009765625, %v1420_v51  ;;  %v1450_v53 = vld [vmem:[#allocation7 + $0x10] sm:$0xff]  ;;  %v3301_v37 = vmul.f32 0.0009765625, %v1418_v36  ;;  %v1453_v2 = vld [vmem:[#allocation7 + $0x28] sm:$0xff]  ;;  %v3309_v27 = vmul.f32 0.0009765625, %v1421_v57 }
 0x410   : > { %v1468_v55 = vmul.f32 0.0009765625, %v1452_v52  ;;  %2353 = vset.pattern.permute.xlu0 %v2465_v33  ;;  %v1466_v11 = vmul.f32 0.0009765625, %v1450_v53  ;;  %v1416_v59 = vld [vmem:[#allocation6] sm:$0xff]  ;;  %v1469_v32 = vmul.f32 0.0009765625, %v1453_v2  ;;  %v1419_v7 = vld [vmem:[#allocation6 + $0x18] sm:$0xff]  ;;  %v1417_v8 = vld [vmem:[#allocation6 + $0x8] sm:$0xff] }
 0x411   : > { %v1448_v61 = vld [vmem:[#allocation7] sm:$0xff]  ;;  %v1484_v23 = vmul.f32 %v3298_v54, %v3298_v54  ;;  %v3305_v62 = vmul.f32 0.0009765625, %v1416_v59  ;;  %v1482_v4 = vmul.f32 %v3301_v37, %v3301_v37  ;;  %v1451_v60 = vld [vmem:[#allocation7 + $0x18] sm:$0xff]  ;;  %v3313_v18 = vmul.f32 0.0009765625, %v1419_v7  ;;  %v1449_v9 = vld [vmem:[#allocation7 + $0x8] sm:$0xff] }
 0x412   : > { %v1464_v1 = vmul.f32 0.0009765625, %v1448_v61  ;;  %v1467_v15 = vmul.f32 0.0009765625, %v1451_v60  ;;  %v1485_v43 = vmul.f32 %v3309_v27, %v3309_v27  ;;  %v3317_v48 = vmul.f32 0.0009765625, %v1417_v8  ;;  %v1424_v24 = vld [vmem:[#allocation6 + $0x40] sm:$0xff]  ;;  %v1423_v56 = vld [vmem:[#allocation6 + $0x38] sm:$0xff]  ;;  %v1422_v38 = vld [vmem:[#allocation6 + $0x30] sm:$0xff] }
 0x413   : > { %v1500_v19 = vsub.f32 %v1468_v55, %v1484_v23  ;;  %v1480_v14 = vmul.f32 %v3305_v62, %v3305_v62  ;;  %v1498_v22 = vsub.f32 %v1466_v11, %v1482_v4  ;;  %v1465_v49 = vmul.f32 0.0009765625, %v1449_v9  ;;  %v1456_v10 = vld [vmem:[#allocation7 + $0x40] sm:$0xff]  ;;  %v1455_v20 = vld [vmem:[#allocation7 + $0x38] sm:$0xff]  ;;  %v1454_v3 = vld [vmem:[#allocation7 + $0x30] sm:$0xff] }
 0x414   : > { %v1483_v17 = vmul.f32 %v3313_v18, %v3313_v18  ;;  %v3323_v26 = vmul.f32 0.0009765625, %v1424_v24  ;;  %v1501_v29 = vsub.f32 %v1469_v32, %v1485_v43  ;;  %v1481_v58 = vmul.f32 %v3317_v48, %v3317_v48  ;;  %v1427_v25 = vld [vmem:[#allocation6 + $0x58] sm:$0xff] }
 0x415   : > { %v3319_v13 = vadd.f32 1e-05, %v1500_v19  ;;  %v1496_v16 = vsub.f32 %v1464_v1, %v1480_v14  ;;  %v3325_v31 = vadd.f32 1e-05, %v1498_v22  ;;  %v1472_v30 = vmul.f32 0.0009765625, %v1456_v10  ;;  %v1459_v5 = vld [vmem:[#allocation7 + $0x58] sm:$0xff] }
 0x416   : > { %v1499_v12 = vsub.f32 %v1467_v15, %v1483_v17  ;;  %v3333_v34 = vadd.f32 1e-05, %v1501_v29  ;;  %v1497_v6 = vsub.f32 %v1465_v49, %v1481_v58  ;;  %v1488_v21 = vmul.f32 %v3323_v26, %v3323_v26  ;;  %v1516_v58 = vld [vmem:[%s4002_s5 + $0x20] sm:$0xff] }
 0x417   : > { %2356 = vrsqrt.f32 %v3319_v13  ;;  %v3330_v0 = vadd.f32 1e-05, %v1496_v16  ;;  %v3343_v39 = vmul.f32 0.0009765625, %v1423_v56  ;;  %vm1590_vm2 = vweird.f32 %v3319_v13 }
 0x418   : > { %2358 = vrsqrt.f32 %v3325_v31  ;;  %v3336_v35 = vadd.f32 1e-05, %v1499_v12  ;;  %v3341_v63 = vadd.f32 1e-05, %v1497_v6  ;;  %v1504_v40 = vsub.f32 %v1472_v30, %v1488_v21 }
 0x419   : > { %2360 = vrsqrt.f32 %v3330_v0  ;;  %v1471_v41 = vmul.f32 0.0009765625, %v1455_v20  ;;  %vm1570_vm3 = vweird.f32 %v3325_v31  ;;  %v1487_v42 = vmul.f32 %v3343_v39, %v3343_v39  ;;  %v1514_v20 = vld [vmem:[%s4002_s5 + $0x10] sm:$0xff] }
 0x41a   : > { %2362 = vrsqrt.f32 %v3333_v34  ;;  %v3351_v44 = vmul.f32 0.0009765625, %v1422_v38  ;;  %vm1550_vm5 = vweird.f32 %v3330_v0  ;;  %vm1600_vm6 = vweird.f32 %v3333_v34 }
 0x41b   : > { %2364 = vrsqrt.f32 %v3336_v35  ;;  %v3357_v46 = vadd.f32 1e-05, %v1504_v40  ;;  %v3359_v47 = vmul.f32 0.0009765625, %v1454_v3  ;;  %vm1580_vm11 = vweird.f32 %v3336_v35 }
 0x41c   : > { %2366 = vrsqrt.f32 %v3341_v63  ;;  %v1503_v51 = vsub.f32 %v1471_v41, %v1487_v42  ;;  %v3368_v52 = vmul.f32 %v3351_v44, %v3351_v44  ;;  %v3370_v55 = vmul.f32 0.0009765625, %v1427_v25  ;;  %v1512_v41 = vld [vmem:[%s4002_s5] sm:$0xff] }
 0x41d   : > { %v3353_v45 = vpop.eup %2356  ;;  %vm1560_vm8 = vweird.f32 %v3341_v63  ;;  %2368 = vrsqrt.f32 %v3357_v46  ;;  %v3379_v11 = vmul.f32 0.0009765625, %v1459_v5  ;;  %vm1630_vm4 = vweird.f32 %v3357_v46 }
 0x41e   : > { %v3361_v50 = vpop.eup %2358  ;;  %v1585_v28 = vmul.f32 %v3353_v45, %v3319_v13  ;;  %vm1591_vm7 = vweird.f32 %v3353_v45  ;;  %v3394_v4 = vadd.f32 1e-05, %v1503_v51  ;;  %v1502_v14 = vsub.f32 %v3359_v47, %v3368_v52  ;;  %v1517_v51 = vld [vmem:[%s4002_s5 + $0x28] sm:$0xff]  ;;  %v1520_v13 = vld [vmem:[%s4002_s5 + $0x40] sm:$0xff] }
 0x41f   : > { %v3372_v36 = vpop.eup %2360  ;;  %v1565_v53 = vmul.f32 %v3361_v50, %v3325_v31  ;;  %vm1571_vm9 = vweird.f32 %v3361_v50  ;;  %vm3416_vm15 = vmor %vm1590_vm2, %vm1591_vm7 }
 0x420   : > { %v3381_v59 = vpop.eup %2362  ;;  %v1586_v61 = vmul.f32 %v3353_v45, %v1585_v28  ;;  %v1545_v23 = vmul.f32 %v3372_v36, %v3330_v0  ;;  %vm1551_vm10 = vweird.f32 %v3372_v36  ;;  %2370 = vrsqrt.f32 %v3394_v4  ;;  %vm3430_vm1 = vmor %vm1570_vm3, %vm1571_vm9 }
 0x421   : > { %v3388_v1 = vpop.eup %2364  ;;  %v1566_v57 = vmul.f32 %v3361_v50, %v1565_v53  ;;  %v1595_v2 = vmul.f32 %v3381_v59, %v3333_v34  ;;  %vm1601_vm12 = vweird.f32 %v3381_v59  ;;  %vm3444_vm2 = vmor %vm1550_vm5, %vm1551_vm10 }
 0x422   : > { %v3396_v32 = vpop.eup %2366  ;;  %v1587_v7 = vmul.f32 0.5, %v1586_v61  ;;  %v1546_v60 = vmul.f32 %v3372_v36, %v1545_v23  ;;  %v1575_v19 = vmul.f32 %v3388_v1, %v3336_v35  ;;  %vm1581_vm13 = vweird.f32 %v3388_v1  ;;  %vm3460_vm5 = vmor %vm1600_vm6, %vm1601_vm12 }
 0x423   : > { %v1567_v15 = vmul.f32 0.5, %v1566_v57  ;;  %v1596_v8 = vmul.f32 %v3381_v59, %v1595_v2  ;;  %v1555_v9 = vmul.f32 %v3396_v32, %v3341_v63  ;;  %vm1561_vm14 = vweird.f32 %v3396_v32  ;;  %v3410_v24 = vpop.eup %2368  ;;  %vm3478_vm6 = vmor %vm1580_vm11, %vm1581_vm13  ;;  %v1515_v57 = vld [vmem:[%s4002_s5 + $0x18] sm:$0xff] }
 0x424   : > { %v1588_v22 = vsub.f32 1.5, %v1587_v7  ;;  %v1547_v43 = vmul.f32 0.5, %v1546_v60  ;;  %v1576_v49 = vmul.f32 %v3388_v1, %v1575_v19  ;;  %v1625_v6 = vmul.f32 %v3410_v24, %v3357_v46  ;;  %vm3495_vm11 = vmor %vm1560_vm8, %vm1561_vm14 }
 0x425   : > { %v1568_v16 = vsub.f32 1.5, %v1567_v15  ;;  %v1597_v17 = vmul.f32 0.5, %v1596_v8  ;;  %v1556_v29 = vmul.f32 %v3396_v32, %v1555_v9  ;;  %vm1631_vm3 = vweird.f32 %v3410_v24  ;;  %v1513_v15 = vld [vmem:[%s4002_s5 + $0x8] sm:$0xff] }
 0x426   : > { %v1589_v12 = vmul.f32 %v3353_v45, %v1588_v22  ;;  %v1548_v30 = vsub.f32 1.5, %v1547_v43  ;;  %v1577_v56 = vmul.f32 0.5, %v1576_v49  ;;  %v1626_v5 = vmul.f32 %v3410_v24, %v1625_v6  ;;  %v3499_v60 = vpop.eup %2370  ;;  %vm3535_vm13 = vmor %vm1630_vm4, %vm1631_vm3 }
 0x427   : > { %v1569_v21 = vmul.f32 %v3361_v50, %v1568_v16  ;;  %v1598_v38 = vsub.f32 1.5, %v1597_v17  ;;  %v1557_v3 = vmul.f32 0.5, %v1556_v29  ;;  %vm1620_vm14 = vweird.f32 %v3394_v4 }
 0x428   : > { %v1593_v40 = vsel %vm3416_vm15, %v3353_v45, %v1589_v12  ;;  %v1549_v25 = vmul.f32 %v3372_v36, %v1548_v30  ;;  %v1578_v42 = vsub.f32 1.5, %v1577_v56  ;;  %v1627_v7 = vmul.f32 0.5, %v1626_v5  ;;  %v1458_v12 = vld [vmem:[#allocation7 + $0x50] sm:$0xff]  ;;  %v1425_v56 = vld [vmem:[#allocation6 + $0x48] sm:$0xff] }
 0x429   : > { %v3465_v28 = vmul.f32 %v1593_v40, %v1516_v58  ;;  %v1573_v45 = vsel %vm3430_vm1, %v3361_v50, %v1569_v21  ;;  %v1599_v53 = vmul.f32 %v3381_v59, %v1598_v38  ;;  %v1558_v61 = vsub.f32 1.5, %v1557_v3  ;;  %v1457_v38 = vld [vmem:[#allocation7 + $0x48] sm:$0xff]  ;;  %v1430_v3 = vld [vmem:[#allocation6 + $0x70] sm:$0xff] }
 0x42a   : > { %v3482_v23 = vmul.f32 %v1573_v45, %v1514_v20  ;;  %v1553_v50 = vsel %vm3444_vm2, %v3372_v36, %v1549_v25  ;;  %v1579_v2 = vmul.f32 %v3388_v1, %v1578_v42  ;;  %v1628_v17 = vsub.f32 1.5, %v1627_v7  ;;  %v1462_v40 = vld [vmem:[#allocation7 + $0x70] sm:$0xff]  ;;  %v1429_v5 = vld [vmem:[#allocation6 + $0x68] sm:$0xff] }
 0x42b   : > { %vm1772_vm7 = vcmp.ge.f32.partialorder %v3465_v28, 0.0  ;;  %v3502_v36 = vmul.f32 %v1553_v50, %v1512_v41  ;;  %v1603_v19 = vsel %vm3460_vm5, %v3381_v59, %v1599_v53  ;;  %v1559_v63 = vmul.f32 %v3396_v32, %v1558_v61 }
 0x42c   : > { %v1820_v8 = vsel %vm1772_vm7, 1, %v2465_v33  ;;  %vm1770_vm8 = vcmp.ge.f32.partialorder %v3482_v23, 0.0  ;;  %v3513_v9 = vmul.f32 %v1603_v19, %v1517_v51  ;;  %v1583_v22 = vsel %vm3478_vm6, %v3388_v1, %v1579_v2  ;;  %v1426_v1 = vld [vmem:[#allocation6 + $0x50] sm:$0xff]  ;;  %v1519_v19 = vld [vmem:[%s4002_s5 + $0x38] sm:$0xff] }
 0x42d   : > { %1845 = vperm.xlu2 %2355, %v1820_v8   ;;  %v1818_v43 = vsel %vm1770_vm8, 1, %v2465_v33  ;;  %vm1768_vm9 = vcmp.ge.f32.partialorder %v3502_v36, 0.0  ;;  %v3520_v59 = vmul.f32 %v1583_v22, %v1515_v57  ;;  %v1563_v49 = vsel %vm3495_vm11, %v3396_v32, %v1559_v63  ;;  %v1461_v57 = vld [vmem:[#allocation7 + $0x68] sm:$0xff] }
 0x42e   : > { %1839 = vperm.xlu1 %2354, %v1818_v43   ;;  %v1816_v10 = vsel %vm1768_vm9, 1, %v2465_v33  ;;  %vm1773_vm10 = vcmp.ge.f32.partialorder %v3513_v9, 0.0  ;;  %v3527_v16 = vmul.f32 %v1563_v49, %v1513_v15  ;;  %v1615_v58 = vmul.f32 %v3499_v60, %v3394_v4 }
 0x42f   : > { %1833 = vperm.xlu0 %2353, %v1816_v10   ;;  %v1821_v29 = vsel %vm1773_vm10, 1, %v2465_v33  ;;  %vm1771_vm12 = vcmp.ge.f32.partialorder %v3520_v59, 0.0  ;;  %v1629_v30 = vmul.f32 %v3410_v24, %v1628_v17  ;;  %vm1621_vm1 = vweird.f32 %v3499_v60  ;;  %v1428_v10 = vld [vmem:[#allocation6 + $0x60] sm:$0xff] }
 0x430   : > { %vm1769_vm15 = vcmp.ge.f32.partialorder %v3527_v16, 0.0  ;;  %v3551_v46 = vadd.f32 1e-05, %v1502_v14  ;;  %v1819_v6 = vsel %vm1771_vm12, 1, %v2465_v33  ;;  %v1616_v20 = vmul.f32 %v3499_v60, %v1615_v58  ;;  %vm3579_vm4 = vmor %vm1620_vm14, %vm1621_vm1 }
 0x431   : > { %v1491_v21 = vmul.f32 %v3370_v55, %v3370_v55  ;;  %v3557_v31 = vmul.f32 0.0009765625, %v1426_v1  ;;  %v1817_v41 = vsel %vm1769_vm15, 1, %v2465_v33  ;;  %v1633_v47 = vsel %vm3535_vm13, %v3410_v24, %v1629_v30 }
 0x432   : > { %2372 = vrsqrt.f32 %v3551_v46  ;;  %v1474_v52 = vmul.f32 0.0009765625, %v1458_v12  ;;  %v3564_v14 = vmul.f32 %v1633_v47, %v1520_v13  ;;  %v1617_v25 = vmul.f32 0.5, %v1616_v20 }
 0x433   : > { %v1507_v0 = vsub.f32 %v3379_v11, %v1491_v21  ;;  %v1490_v42 = vmul.f32 %v3557_v31, %v3557_v31  ;;  %v3569_v45 = vmul.f32 0.0009765625, %v1425_v56  ;;  %v1473_v51 = vmul.f32 0.0009765625, %v1457_v38  ;;  %v1463_v21 = vld [vmem:[#allocation7 + $0x78] sm:$0xff] }
 0x434   : > { %v3571_v53 = vmul.f32 0.0009765625, %v1430_v3  ;;  %v1478_v34 = vmul.f32 0.0009765625, %v1462_v40  ;;  %v1618_v24 = vsub.f32 1.5, %v1617_v25  ;;  %v3587_v7 = vmul.f32 0.0009765625, %v1429_v5 }
 0x435   : > { %1848 = vperm.xlu2 %2355, %v1821_v29   ;;  %v3573_v61 = vadd.f32 1e-05, %v1507_v0  ;;  %v1506_v50 = vsub.f32 %v1474_v52, %v1490_v42  ;;  %v1489_v2 = vmul.f32 %v3569_v45, %v3569_v45  ;;  %vm1776_vm2 = vcmp.ge.f32.partialorder %v3564_v14, 0.0  ;;  %v1460_v29 = vld [vmem:[#allocation7 + $0x60] sm:$0xff] }
 0x436   : > { %1842 = vperm.xlu1 %2354, %v1819_v6   ;;  %v1494_v35 = vmul.f32 %v3571_v53, %v3571_v53  ;;  %v1619_v4 = vmul.f32 %v3499_v60, %v1618_v24  ;;  %v1477_v43 = vmul.f32 0.0009765625, %v1461_v57  ;;  %v1493_v49 = vmul.f32 %v3587_v7, %v3587_v7  ;;  %v1518_v57 = vld [vmem:[%s4002_s5 + $0x30] sm:$0xff] }
 0x437   : > { %1836 = vperm.xlu0 %2353, %v1817_v41   ;;  %2374 = vrsqrt.f32 %v3573_v61  ;;  %v3595_v15 = vadd.f32 1e-05, %v1506_v50  ;;  %v1505_v8 = vsub.f32 %v1473_v51, %v1489_v2  ;;  %v1824_v32 = vsel %vm1776_vm2, 1, %v2465_v33 }
 0x438   : > { %v2373_v63 = vpop.eup %2372  ;;  %v1510_v22 = vsub.f32 %v1478_v34, %v1494_v35  ;;  %v1623_v17 = vsel %vm3579_vm4, %v3499_v60, %v1619_v4  ;;  %vm1610_vm3 = vweird.f32 %v3551_v46  ;;  %v1509_v56 = vsub.f32 %v1477_v43, %v1493_v49  ;;  %v1431_v60 = vld [vmem:[#allocation6 + $0x78] sm:$0xff] }
 0x439   : > { %v1605_v1 = vmul.f32 %v2373_v63, %v3551_v46  ;;  %2376 = vrsqrt.f32 %v3595_v15  ;;  %v3605_v58 = vmul.f32 %v1623_v17, %v1519_v19  ;;  %v3607_v12 = vadd.f32 1e-05, %v1505_v8 }
 0x43a   : > { %v3609_v13 = vadd.f32 1e-05, %v1510_v22  ;;  %v3612_v6 = vmul.f32 0.0009765625, %v1428_v10  ;;  %vm1611_vm6 = vweird.f32 %v2373_v63  ;;  %v1476_v20 = vmul.f32 0.0009765625, %v1460_v29 }
 0x43b   : > { %v1606_v30 = vmul.f32 %v2373_v63, %v1605_v1  ;;  %vm1775_vm5 = vcmp.ge.f32.partialorder %v3605_v58, 0.0  ;;  %2378 = vrsqrt.f32 %v3607_v12  ;;  %v3618_v41 = vadd.f32 1e-05, %v1509_v56  ;;  %vm3629_vm11 = vmor %vm1610_vm3, %vm1611_vm6 }
 0x43c   : > { %v1823_v3 = vsel %vm1775_vm5, 1, %v2465_v33  ;;  %2380 = vrsqrt.f32 %v3609_v13  ;;  %v1492_v52 = vmul.f32 %v3612_v6, %v3612_v6  ;;  %v3623_v25 = vmul.f32 0.0009765625, %v1431_v60 }
 0x43d   : > { %v2375_v38 = vpop.eup %2374  ;;  %1857 = vperm.xlu2 %2355, %v1824_v32   ;;  %v1607_v40 = vmul.f32 0.5, %v1606_v30  ;;  %2382 = vrsqrt.f32 %v3618_v41  ;;  %v1479_v5 = vmul.f32 0.0009765625, %v1463_v21  ;;  %vm1660_vm7 = vweird.f32 %v3573_v61 }
 0x43e   : > { %1854 = vperm.xlu1 %2354, %v1823_v3   ;;  %v1655_v47 = vmul.f32 %v2375_v38, %v3573_v61  ;;  %v1508_v50 = vsub.f32 %v1476_v20, %v1492_v52  ;;  %vm1650_vm8 = vweird.f32 %v3595_v15  ;;  %vm1640_vm9 = vweird.f32 %v3607_v12 }
 0x43f   : > { %v2377_v0 = vpop.eup %2376  ;;  %v1608_v42 = vsub.f32 1.5, %v1607_v40  ;;  %v1495_v46 = vmul.f32 %v3623_v25, %v3623_v25  ;;  %vm1661_vm10 = vweird.f32 %v2375_v38  ;;  %vm1690_vm15 = vweird.f32 %v3609_v13 }
 0x440   : > { %v1656_v34 = vmul.f32 %v2375_v38, %v1655_v47  ;;  %v1645_v24 = vmul.f32 %v2377_v0, %v3595_v15  ;;  %v3642_v4 = vadd.f32 1e-05, %v1508_v50  ;;  %vm1651_vm12 = vweird.f32 %v2377_v0  ;;  %vm3654_vm13 = vmor %vm1660_vm7, %vm1661_vm10 }
 0x441   : > { %v1609_v11 = vmul.f32 %v2373_v63, %v1608_v42  ;;  %v2379_v2 = vpop.eup %2378  ;;  %v1511_v49 = vsub.f32 %v1479_v5, %v1495_v46  ;;  %vm3668_vm4 = vmor %vm1650_vm8, %vm1651_vm12  ;;  %v1522_v42 = vld [vmem:[%s4002_s5 + $0x50] sm:$0xff]  ;;  %vm1680_vm3 = vweird.f32 %v3618_v41 }
 0x442   : > { %v1657_v35 = vmul.f32 0.5, %v1656_v34  ;;  %v1646_v19 = vmul.f32 %v2377_v0, %v1645_v24  ;;  %v2381_v8 = vpop.eup %2380  ;;  %v1635_v43 = vmul.f32 %v2379_v2, %v3607_v12  ;;  %vm1641_vm14 = vweird.f32 %v2379_v2 }
 0x443   : > { %v1613_v22 = vsel %vm3629_vm11, %v2373_v63, %v1609_v11  ;;  %v1685_v29 = vmul.f32 %v2381_v8, %v3609_v13  ;;  %v3650_v32 = vpop.eup %2382  ;;  %2384 = vrsqrt.f32 %v3642_v4  ;;  %v1523_v63 = vld [vmem:[%s4002_s5 + $0x58] sm:$0xff]  ;;  %vm1691_vm2 = vweird.f32 %v2381_v8  ;;  %vm3688_vm5 = vmor %vm1640_vm9, %vm1641_vm14 }
 0x444   : > { %v3647_v10 = vmul.f32 %v1613_v22, %v1518_v57  ;;  %v1658_v17 = vsub.f32 1.5, %v1657_v35  ;;  %v1647_v1 = vmul.f32 0.5, %v1646_v19  ;;  %v1636_v56 = vmul.f32 %v2379_v2, %v1635_v43  ;;  %vm3702_vm7 = vmor %vm1690_vm15, %vm1691_vm2 }
 0x445   : > { %v1686_v21 = vmul.f32 %v2381_v8, %v1685_v29  ;;  %v1675_v47 = vmul.f32 %v3650_v32, %v3618_v41  ;;  %v1543_v15 = vadd.f32 1e-05, %v1511_v49  ;;  %vm1681_vm6 = vweird.f32 %v3650_v32  ;;  %v1526_v49 = vld [vmem:[%s4002_s5 + $0x70] sm:$0xff] }
 0x446   : > { %vm1774_vm1 = vcmp.ge.f32.partialorder %v3647_v10, 0.0  ;;  %v1659_v60 = vmul.f32 %v2375_v38, %v1658_v17  ;;  %v1648_v20 = vsub.f32 1.5, %v1647_v1  ;;  %v1637_v40 = vmul.f32 0.5, %v1636_v56  ;;  %vm3723_vm9 = vmor %vm1680_vm3, %vm1681_vm6 }
 0x447   : > { %v1822_v61 = vsel %vm1774_vm1, 1, %v2465_v33  ;;  %v1687_v51 = vmul.f32 0.5, %v1686_v21  ;;  %v1676_v50 = vmul.f32 %v3650_v32, %v1675_v47  ;;  %2386 = vrsqrt.f32 %v1543_v15 }
 0x448   : > { %1851 = vperm.xlu0 %2353, %v1822_v61   ;;  %v1663_v52 = vsel %vm3654_vm13, %v2375_v38, %v1659_v60  ;;  %v1649_v5 = vmul.f32 %v2377_v0, %v1648_v20  ;;  %v1638_v24 = vsub.f32 1.5, %v1637_v40  ;;  %vm1670_vm12 = vweird.f32 %v3642_v4 }
 0x449   : > { %v3679_v34 = vmul.f32 %v1663_v52, %v1523_v63  ;;  %v1688_v11 = vsub.f32 1.5, %v1687_v51  ;;  %v2385_v46 = vpop.eup %2384  ;;  %v1677_v22 = vmul.f32 0.5, %v1676_v50  ;;  %v1741_v60 = vmul.f32 %v3513_v9, %v3309_v27 }
 0x44a   : > { %v1653_v57 = vsel %vm3668_vm4, %v2377_v0, %v1649_v5  ;;  %v1521_v0 = vld [vmem:[%s4002_s5 + $0x48] sm:$0xff]  ;;  %v1639_v19 = vmul.f32 %v2379_v2, %v1638_v24  ;;  %v1665_v1 = vmul.f32 %v2385_v46, %v3642_v4  ;;  %vm1671_vm13 = vweird.f32 %v2385_v46  ;;  %v1524_v4 = vld [vmem:[%s4002_s5 + $0x60] sm:$0xff] }
 0x44b   : > { %vm1779_vm11 = vcmp.ge.f32.partialorder %v3679_v34, 0.0  ;;  %v3694_v35 = vmul.f32 %v1653_v57, %v1522_v42  ;;  %v1689_v17 = vmul.f32 %v2381_v8, %v1688_v11  ;;  %v1678_v29 = vsub.f32 1.5, %v1677_v22  ;;  %vm1672_vm15 = vmor %vm1670_vm12, %vm1671_vm13 }
 0x44c   : > { %v1827_v43 = vsel %vm1779_vm11, 1, %v2465_v33  ;;  %v1643_v13 = vsel %vm3688_vm5, %v2379_v2, %v1639_v19  ;;  %v1666_v20 = vmul.f32 %v2385_v46, %v1665_v1  ;;  %v1525_v2 = vld [vmem:[%s4002_s5 + $0x68] sm:$0xff]  ;;  %vm1700_vm4 = vweird.f32 %v1543_v15  ;;  %v1723_v1 = vld [vmem:[%s4003_s6 + $0x18] sm:$0xff] }
 0x44d   : > { %1866 = vperm.xlu2 %2355, %v1827_v43   ;;  %vm1778_vm8 = vcmp.ge.f32.partialorder %v3694_v35, 0.0  ;;  %v3715_v56 = vmul.f32 %v1643_v13, %v1521_v0  ;;  %v1693_v63 = vsel %vm3702_vm7, %v2381_v8, %v1689_v17  ;;  %v1679_v61 = vmul.f32 %v3650_v32, %v1678_v29  ;;  %v2387_v3 = vpop.eup %2386  ;;  %v1527_v0 = vld [vmem:[%s4002_s5 + $0x78] sm:$0xff] }
 0x44e   : > { %v1826_v30 = vsel %vm1778_vm8, 1, %v2465_v33  ;;  %v3727_v21 = vmul.f32 %v1693_v63, %v1526_v49  ;;  %v1667_v8 = vmul.f32 0.5, %v1666_v20  ;;  %v1695_v47 = vmul.f32 %v2387_v3, %v1543_v15 }
 0x44f   : > { %1863 = vperm.xlu1 %2354, %v1826_v30   ;;  %vm1777_vm10 = vcmp.ge.f32.partialorder %v3715_v56, 0.0  ;;  %v1683_v40 = vsel %vm3723_vm9, %v3650_v32, %v1679_v61  ;;  %vm1701_vm2 = vweird.f32 %v2387_v3  ;;  %v1739_v17 = vmul.f32 %v3520_v59, %v3313_v18 }
 0x450   : > { %v1825_v41 = vsel %vm1777_vm10, 1, %v2465_v33  ;;  %vm1782_vm14 = vcmp.ge.f32.partialorder %v3727_v21, 0.0  ;;  %v3741_v42 = vmul.f32 %v1683_v40, %v1525_v2  ;;  %v1668_v5 = vsub.f32 1.5, %v1667_v8  ;;  %vm1702_vm3 = vmor %vm1700_vm4, %vm1701_vm2 }
 0x451   : > { %1860 = vperm.xlu0 %2353, %v1825_v41   ;;  %v1830_v52 = vsel %vm1782_vm14, 1, %v2465_v33  ;;  %v1696_v51 = vmul.f32 %v2387_v3, %v1695_v47  ;;  %v1755_v13 = vsub.f32 %v1723_v1, %v1739_v17  ;;  %v1737_v18 = vmul.f32 %v3527_v16, %v3317_v48  ;;  %v1725_v48 = vld [vmem:[%s4003_s6 + $0x28] sm:$0xff] }
 0x452   : > { %vm1781_vm1 = vcmp.ge.f32.partialorder %v3741_v42, 0.0  ;;  %v1669_v24 = vmul.f32 %v2385_v46, %v1668_v5  ;;  %v1757_v20 = vsub.f32 %v1725_v48, %v1741_v60  ;;  %v1740_v2 = vmul.f32 %v3465_v28, %v3298_v54  ;;  %v1728_v54 = vld [vmem:[%s4003_s6 + $0x40] sm:$0xff]  ;;  %v1810_v60 = vld [vmem:[#allocation9 + $0x50] sm:$0xff] }
 0x453   : > { %v1829_v50 = vsel %vm1781_vm1, 1, %v2465_v33  ;;  %v1697_v32 = vmul.f32 0.5, %v1696_v51  ;;  %v1745_v27 = vmul.f32 %v3715_v56, %v3569_v45  ;;  %v1743_v41 = vmul.f32 %v3605_v58, %v3343_v39  ;;  %v1727_v45 = vld [vmem:[%s4003_s6 + $0x38] sm:$0xff]  ;;  %v1730_v51 = vld [vmem:[%s4003_s6 + $0x50] sm:$0xff] }
 0x454   : > { %v1673_v57 = vsel %vm1672_vm15, %v2385_v46, %v1669_v24  ;;  %v1720_v46 = vld [vmem:[%s4003_s6] sm:$0xff]  ;;  %v1747_v47 = vmul.f32 %v3679_v34, %v3370_v55  ;;  %v1731_v39 = vld [vmem:[%s4003_s6 + $0x58] sm:$0xff]  ;;  %v1746_v5 = vmul.f32 %v3694_v35, %v3557_v31  ;;  %v1750_v31 = vmul.f32 %v3727_v21, %v3571_v53 }
 0x455   : > { %1875 = vperm.xlu2 %2355, %v1830_v52   ;;  %v3748_v38 = vmul.f32 %v1673_v57, %v1524_v4  ;;  %v1698_v11 = vsub.f32 1.5, %v1697_v32  ;;  %v1759_v40 = vsub.f32 %v1727_v45, %v1743_v41  ;;  %v1735_v4 = vld [vmem:[%s4003_s6 + $0x78] sm:$0xff]  ;;  %v1749_v57 = vmul.f32 %v3741_v42, %v3587_v7  ;;  %v1800_v41 = vld [vmem:[#allocation9] sm:$0xff] }
 0x456   : > { %v1763_v52 = vsub.f32 %v1731_v39, %v1747_v47  ;;  %v1762_v24 = vsub.f32 %v1730_v51, %v1746_v5 }
 0x457   : > { %1872 = vperm.xlu1 %2354, %v1829_v50   ;;  %vm1780_vm5 = vcmp.ge.f32.partialorder %v3748_v38, 0.0  ;;  %v1699_v19 = vmul.f32 %v2387_v3, %v1698_v11 }
 0x458   : > { %v1828_v12 = vsel %vm1780_vm5, 1, %v2465_v33 }
 0x459   : > { %1869 = vperm.xlu0 %2353, %v1828_v12   ;;  %v1703_v22 = vsel %vm1702_vm3, %v2387_v3, %v1699_v19  ;;  %v1744_v3 = vmul.f32 %v3564_v14, %v3323_v26  ;;  %v1748_v26 = vmul.f32 %v3748_v38, %v3612_v6  ;;  %v1801_v12 = vld [vmem:[#allocation9 + $0x8] sm:$0xff] }
 0x45a   : > { %v3755_v43 = vmul.f32 %v1703_v22, %v1527_v0 }
 0x45b   : > { %v1760_v8 = vsub.f32 %v1728_v54, %v1744_v3 }
 0x45c   : > { %vm1783_vm6 = vcmp.ge.f32.partialorder %v3755_v43, 0.0  ;;  %v1751_v55 = vmul.f32 %v3755_v43, %v3623_v25 }
 0x45d   : > { %1919 = vperm.xlu2 %2355, %v3527_v16   ;;  %v1831_v15 = vsel %vm1783_vm6, 1, %v2465_v33  ;;  %v1736_v33 = vmul.f32 %v3502_v36, %v3305_v62  ;;  %v1738_v62 = vmul.f32 %v3482_v23, %v3301_v37  ;;  %v1742_v37 = vmul.f32 %v3647_v10, %v3351_v44 }
 0x45e   : > { %v1767_v32 = vsub.f32 %v1735_v4, %v1751_v55 }
 0x45f   : > { %1914 = vperm.xlu1 %2354, %v3502_v36   ;;  %v1752_v49 = vsub.f32 %v1720_v46, %v1736_v33  ;;  %v1722_v36 = vld [vmem:[%s4003_s6 + $0x10] sm:$0xff]  ;;  %v1804_v46 = vld [vmem:[#allocation9 + $0x20] sm:$0xff] }
 0x460   : > { %v1754_v30 = vsub.f32 %v1722_v36, %v1738_v62 }
 0x461   : > { %1878 = vperm.xlu0 %2353, %v1831_v15  }
 0x465   : > { %1934 = vperm.xlu2 %2355, %v3465_v28  }
 0x467   : > { %1929 = vperm.xlu1 %2354, %v3520_v59   ;;  %v1721_v59 = vld [vmem:[%s4003_s6 + $0x8] sm:$0xff] }
 0x468   : > { %v1753_v63 = vsub.f32 %v1721_v59, %v1737_v18 }
 0x469   : > { %1924 = vperm.xlu0 %2353, %v3482_v23   ;;  %v1726_v23 = vld [vmem:[%s4003_s6 + $0x30] sm:$0xff] }
 0x46a   : > { %v1758_v16 = vsub.f32 %v1726_v23, %v1742_v37 }
 0x46d   : > { %1949 = vperm.xlu2 %2355, %v3605_v58  }
 0x46f   : > { %1944 = vperm.xlu1 %2354, %v3647_v10   ;;  %v1724_v10 = vld [vmem:[%s4003_s6 + $0x20] sm:$0xff] }
 0x470   : > { %v1756_v61 = vsub.f32 %v1724_v10, %v1740_v2  ;;  %v1797_v10 = vld [vmem:[#allocation8 + $0x68] sm:$0xff] }
 0x471   : > { %1939 = vperm.xlu0 %2353, %v3513_v9   ;;  %v1729_v9 = vld [vmem:[%s4003_s6 + $0x48] sm:$0xff] }
 0x472   : > { %v1761_v28 = vsub.f32 %v1729_v9, %v1745_v27  ;;  %v1813_v27 = vld [vmem:[#allocation9 + $0x68] sm:$0xff] }
 0x475   : > { %1964 = vperm.xlu2 %2355, %v3694_v35   ;;  %v1734_v35 = vld [vmem:[%s4003_s6 + $0x70] sm:$0xff] }
 0x476   : > { %v1766_v25 = vsub.f32 %v1734_v35, %v1750_v31  ;;  %v1790_v35 = vld [vmem:[#allocation8 + $0x30] sm:$0xff] }
 0x477   : > { %1959 = vperm.xlu1 %2354, %v3715_v56  }
 0x479   : > { %1954 = vperm.xlu0 %2353, %v3564_v14   ;;  %v1732_v14 = vld [vmem:[%s4003_s6 + $0x60] sm:$0xff] }
 0x47a   : > { %v1764_v58 = vsub.f32 %v1732_v14, %v1748_v26 }
 0x47d   : > { %1979 = vperm.xlu2 %2355, %v3741_v42   ;;  %v1788_v42 = vld [vmem:[#allocation8 + $0x20] sm:$0xff] }
 0x47f   : > { %1974 = vperm.xlu1 %2354, %v3748_v38   ;;  %v1733_v38 = vld [vmem:[%s4003_s6 + $0x68] sm:$0xff] }
 0x480   : > { %v1765_v0 = vsub.f32 %v1733_v38, %v1749_v57 }
 0x481   : > { %1969 = vperm.xlu0 %2353, %v3679_v34  }
 0x485   : > { %2010 = vperm.xlu2 %2355, %v1752_v49  }
 0x487   : > { %1989 = vperm.xlu1 %2354, %v3755_v43   ;;  %v3789_v29 = vpop.permute.xlu2 %1845 }
 0x488   : > { %vm1884_vm7 = vcmp.eq.s32.totalorder %v3789_v29, 1 }
 0x489   : > { %1984 = vperm.xlu0 %2353, %v3727_v21   ;;  %v1785_v21 = vld [vmem:[#allocation8 + $0x8] sm:$0xff]  ;;  %v1900_v49 = vsel %vm1884_vm7, %v1788_v42, %v1804_v46 }
 0x48d   : > { %2025 = vperm.xlu2 %2355, %v1755_v13   ;;  %v1791_v13 = vld [vmem:[#allocation8 + $0x38] sm:$0xff] }
 0x48f   : > { %2020 = vperm.xlu1 %2354, %v1754_v30   ;;  %v3809_v44 = vpop.permute.xlu2 %1848  ;;  %v1807_v30 = vld [vmem:[#allocation9 + $0x38] sm:$0xff] }
 0x490   : > { %vm1885_vm3 = vcmp.eq.s32.totalorder %v3809_v44, 1 }
 0x491   : > { %2015 = vperm.xlu0 %2353, %v1753_v63   ;;  %v1794_v63 = vld [vmem:[#allocation8 + $0x50] sm:$0xff] }
 0x495   : > { %2040 = vperm.xlu2 %2355, %v1758_v16  }
 0x497   : > { %2035 = vperm.xlu1 %2354, %v1757_v20   ;;  %v3829_v56 = vpop.permute.xlu2 %1857 }
 0x498   : > { %vm1888_vm5 = vcmp.eq.s32.totalorder %v3829_v56, 1 }
 0x499   : > { %2030 = vperm.xlu0 %2353, %v1756_v61  }
 0x49d   : > { %2055 = vperm.xlu2 %2355, %v1761_v28  }
 0x49f   : > { %2050 = vperm.xlu1 %2354, %v1760_v8   ;;  %v1784_v8 = vld [vmem:[#allocation8] sm:$0xff] }
 0x4a0   : > { %v3843_v6 = vpop.permute.xlu1 %1839 }
 0x4a1   : > { %2045 = vperm.xlu0 %2353, %v1759_v40   ;;  %v3850_v34 = vpop.permute.xlu0 %1833  ;;  %vm1882_vm4 = vcmp.eq.s32.totalorder %v3843_v6, 1  ;;  %v1815_v6 = vld [vmem:[#allocation9 + $0x78] sm:$0xff] }
 0x4a2   : > { %vm1880_vm12 = vcmp.eq.s32.totalorder %v3850_v34, 1 }
 0x4a3   : > { %v1896_v45 = vsel %vm1880_vm12, %v1784_v8, %v1800_v41 }
 0x4a5   : > { %2070 = vperm.xlu2 %2355, %v1764_v58   ;;  %v1787_v58 = vld [vmem:[#allocation8 + $0x18] sm:$0xff] }
 0x4a7   : > { %2065 = vperm.xlu1 %2354, %v1763_v52   ;;  %v3855_v50 = vpop.permute.xlu2 %1866  ;;  %v1803_v52 = vld [vmem:[#allocation9 + $0x18] sm:$0xff] }
 0x4a8   : > { %v1843_v11 = vpop.permute.xlu1 %1842  ;;  %vm1891_vm6 = vcmp.eq.s32.totalorder %v3855_v50, 1 }
 0x4a9   : > { %2060 = vperm.xlu0 %2353, %v1762_v24   ;;  %v1837_v53 = vpop.permute.xlu0 %1836  ;;  %vm1883_vm13 = vcmp.eq.s32.totalorder %v1843_v11, 1 }
 0x4aa   : > { %vm1881_vm11 = vcmp.eq.s32.totalorder %v1837_v53, 1  ;;  %v1899_v51 = vsel %vm1883_vm13, %v1787_v58, %v1803_v52 }
 0x4ab   : > { %v1897_v15 = vsel %vm1881_vm11, %v1785_v21, %v1801_v12  ;;  %v1793_v12 = vld [vmem:[#allocation8 + $0x48] sm:$0xff] }
 0x4ad   : > { %2085 = vperm.xlu2 %2355, %v1767_v32   ;;  %v1806_v32 = vld [vmem:[#allocation9 + $0x30] sm:$0xff] }
 0x4af   : > { %2080 = vperm.xlu1 %2354, %v1766_v25   ;;  %v3867_v19 = vpop.permute.xlu2 %1875 }
 0x4b0   : > { %v1855_v22 = vpop.permute.xlu1 %1854  ;;  %vm1894_vm11 = vcmp.eq.s32.totalorder %v3867_v19, 1 }
 0x4b1   : > { %2075 = vperm.xlu0 %2353, %v1765_v0   ;;  %vm1887_vm8 = vcmp.eq.s32.totalorder %v1855_v22, 1  ;;  %v1809_v22 = vld [vmem:[#allocation9 + $0x48] sm:$0xff] }
 0x4b2   : > { %v1903_v18 = vsel %vm1887_vm8, %v1791_v13, %v1807_v30  ;;  %v1812_v13 = vld [vmem:[#allocation9 + $0x60] sm:$0xff]  ;;  %v1786_v30 = vld [vmem:[#allocation8 + $0x10] sm:$0xff] }
 0x4b7   : > { %v1920_v43 = vpop.permute.xlu2 %1919 }
 0x4b8   : > { %v3869_v33 = vmul.f32 %v1920_v43, %v1897_v15 }
 0x4ba   : > { %v1852_v7 = vpop.permute.xlu0 %1851 }
 0x4bb   : > { %vm1886_vm14 = vcmp.eq.s32.totalorder %v1852_v7, 1 }
 0x4bc   : > { %v1902_v57 = vsel %vm1886_vm14, %v1790_v35, %v1806_v32 }
 0x4bf   : > { %v1935_v17 = vpop.permute.xlu2 %1934 }
 0x4c0   : > { %v3872_v1 = vmul.f32 %v1935_v17, %v1900_v49 }
 0x4c1   : > { %v1864_v62 = vpop.permute.xlu1 %1863 }
 0x4c2   : > { %vm1890_vm9 = vcmp.eq.s32.totalorder %v1864_v62, 1  ;;  %v1796_v62 = vld [vmem:[#allocation8 + $0x60] sm:$0xff] }
 0x4c3   : > { %v1861_v36 = vpop.permute.xlu0 %1860  ;;  %v1906_v48 = vsel %vm1890_vm9, %v1794_v63, %v1810_v60 }
 0x4c4   : > { %vm1889_vm15 = vcmp.eq.s32.totalorder %v1861_v36, 1 }
 0x4c5   : > { %v1905_v15 = vsel %vm1889_vm15, %v1793_v12, %v1809_v22  ;;  %v1798_v22 = vld [vmem:[#allocation8 + $0x70] sm:$0xff] }
 0x4c7   : > { %v1950_v59 = vpop.permute.xlu2 %1949 }
 0x4c8   : > { %v3874_v37 = vmul.f32 %v1950_v59, %v1903_v18  ;;  %v1802_v18 = vld [vmem:[#allocation9 + $0x10] sm:$0xff] }
 0x4c9   : > { %v1873_v23 = vpop.permute.xlu1 %1872  ;;  %v1898_v60 = vsel %vm1882_vm4, %v1786_v30, %v1802_v18 }
 0x4ca   : > { %vm1893_vm10 = vcmp.eq.s32.totalorder %v1873_v23, 1 }
 0x4cb   : > { %v3876_v29 = vpop.permute.xlu0 %1869  ;;  %v1909_v61 = vsel %vm1893_vm10, %v1797_v10, %v1813_v27  ;;  %v1799_v10 = vld [vmem:[#allocation8 + $0x78] sm:$0xff] }
 0x4cc   : > { %vm1892_vm1 = vcmp.eq.s32.totalorder %v3876_v29, 1 }
 0x4cd   : > { %v1908_v59 = vsel %vm1892_vm1, %v1796_v62, %v1812_v13 }
 0x4cf   : > { %v1965_v16 = vpop.permute.xlu2 %1964 }
 0x4d0   : > { %v3878_v20 = vmul.f32 %v1965_v16, %v1906_v48 }
 0x4d1   : > { %v1915_v2 = vpop.permute.xlu1 %1914 }
 0x4d2   : > { %v1992_v14 = vmul.f32 %v1915_v2, %v1896_v45 }
 0x4d3   : > { %v3880_v9 = vpop.permute.xlu0 %1878 }
 0x4d4   : > { %vm1895_vm2 = vcmp.eq.s32.totalorder %v3880_v9, 1 }
 0x4d5   : > { %v1911_v41 = vsel %vm1895_vm2, %v1799_v10, %v1815_v6 }
 0x4d7   : > { %v1980_v3 = vpop.permute.xlu2 %1979 }
 0x4d8   : > { %v3882_v54 = vmul.f32 %v1980_v3, %v1909_v61  ;;  %v1789_v3 = vld [vmem:[#allocation8 + $0x28] sm:$0xff] }
 0x4d9   : > { %v1930_v28 = vpop.permute.xlu1 %1929 }
 0x4da   : > { %v1995_v34 = vmul.f32 %v1930_v28, %v1899_v51  ;;  %v1805_v28 = vld [vmem:[#allocation9 + $0x28] sm:$0xff]  ;;  %v1792_v51 = vld [vmem:[#allocation8 + $0x40] sm:$0xff] }
 0x4db   : > { %v1925_v26 = vpop.permute.xlu0 %1924 }
 0x4dc   : > { %v1994_v16 = vmul.f32 %v1925_v26, %v1898_v60 }
 0x4df   : > { %v2011_v40 = vpop.permute.xlu2 %2010 }
 0x4e0   : > { %v2088_v47 = vadd.f32 %v2011_v40, %v1992_v14  ;;  %v1901_v14 = vsel %vm1885_vm3, %v1789_v3, %v1805_v28 }
 0x4e1   : > { %v1945_v39 = vpop.permute.xlu1 %1944 }
 0x4e2   : > { %v2104_v5 = vmax.f32 %v2088_v47, 0.0  ;;  %v1998_v11 = vmul.f32 %v1945_v39, %v1902_v57  ;;  %v1811_v57 = vld [vmem:[#allocation9 + $0x58] sm:$0xff] }
 0x4e3   : > { %v1940_v55 = vpop.permute.xlu0 %1939 }
 0x4e4   : > { %2120 = vst.msk [vmem:[%s4004_s7] sm:$0xff] %vm1333_vm0, %v2104_v5  ;;  %v1997_v40 = vmul.f32 %v1940_v55, %v1901_v14 }
 0x4e7   : > { %v2026_v4 = vpop.permute.xlu2 %2025 }
 0x4e8   : > { %v2091_v24 = vadd.f32 %v2026_v4, %v1995_v34  ;;  %v1808_v34 = vld [vmem:[#allocation9 + $0x40] sm:$0xff] }
 0x4e9   : > { %v1960_v31 = vpop.permute.xlu1 %1959 }
 0x4ea   : > { %v2107_v25 = vmax.f32 %v2091_v24, 0.0  ;;  %v2001_v42 = vmul.f32 %v1960_v31, %v1905_v15  ;;  %v1904_v24 = vsel %vm1888_vm5, %v1792_v51, %v1808_v34 }
 0x4eb   : > { %v3893_v38 = vpop.permute.xlu0 %1954 }
 0x4ec   : > { %2123 = vst.msk [vmem:[%s4004_s7 + $0x18] sm:$0xff] %vm1333_vm0, %v2107_v25  ;;  %v2000_v31 = vmul.f32 %v3893_v38, %v1904_v24  ;;  %v1795_v25 = vld [vmem:[#allocation8 + $0x58] sm:$0xff] }
 0x4ed   : > { %v1907_v38 = vsel %vm1891_vm6, %v1795_v25, %v1811_v57 }
 0x4ef   : > { %v2041_v0 = vpop.permute.xlu2 %2040 }
 0x4f0   : > { %v2094_v53 = vadd.f32 %v2041_v0, %v1998_v11 }
 0x4f1   : > { %v1975_v21 = vpop.permute.xlu1 %1974 }
 0x4f2   : > { %v2110_v43 = vmax.f32 %v2094_v53, 0.0  ;;  %v2004_v63 = vmul.f32 %v1975_v21, %v1908_v59 }
 0x4f3   : > { %v3899_v7 = vpop.permute.xlu0 %1969 }
 0x4f4   : > { %2126 = vst.msk [vmem:[%s4004_s7 + $0x30] sm:$0xff] %vm1333_vm0, %v2110_v43  ;;  %v2003_v53 = vmul.f32 %v3899_v7, %v1907_v38  ;;  %v1814_v43 = vld [vmem:[#allocation9 + $0x70] sm:$0xff] }
 0x4f5   : > { %v1910_v7 = vsel %vm1894_vm11, %v1798_v22, %v1814_v43 }
 0x4f7   : > { %v2056_v46 = vpop.permute.xlu2 %2055 }
 0x4f8   : > { %v2097_v49 = vadd.f32 %v2056_v46, %v2001_v42 }
 0x4f9   : > { %v1990_v17 = vpop.permute.xlu1 %1989 }
 0x4fa   : > { %v2113_v36 = vmax.f32 %v2097_v49, 0.0  ;;  %v2007_v26 = vmul.f32 %v1990_v17, %v1911_v41 }
 0x4fb   : > { %v3907_v23 = vpop.permute.xlu0 %1984 }
 0x4fc   : > { %2129 = vst.msk [vmem:[%s4004_s7 + $0x48] sm:$0xff] %vm1333_vm0, %v2113_v36  ;;  %v2006_v46 = vmul.f32 %v3907_v23, %v1910_v7 }
 0x4ff   : > { %v2071_v48 = vpop.permute.xlu2 %2070 }
 0x500   : > { %v2100_v29 = vadd.f32 %v2071_v48, %v2004_v63 }
 0x501   : > { %v2021_v2 = vpop.permute.xlu1 %2020 }
 0x502   : > { %v2090_v27 = vadd.f32 %v2021_v2, %v1994_v16  ;;  %v2116_v61 = vmax.f32 %v2100_v29, 0.0 }
 0x503   : > { %v2016_v45 = vpop.permute.xlu0 %2015 }
 0x504   : > { %v2106_v8 = vmax.f32 %v2090_v27, 0.0  ;;  %2132 = vst.msk [vmem:[%s4004_s7 + $0x60] sm:$0xff] %vm1333_vm0, %v2116_v61  ;;  %v2089_v9 = vadd.f32 %v2016_v45, %v3869_v33 }
 0x506   : > { %2122 = vst.msk [vmem:[%s4004_s7 + $0x10] sm:$0xff] %vm1333_vm0, %v2106_v8  ;;  %v2105_v47 = vmax.f32 %v2089_v9, 0.0 }
 0x507   : > { %v2086_v44 = vpop.permute.xlu2 %2085 }
 0x508   : > { %v2103_v39 = vadd.f32 %v2086_v44, %v2007_v26  ;;  %2121 = vst.msk [vmem:[%s4004_s7 + $0x8] sm:$0xff] %vm1333_vm0, %v2105_v47 }
 0x509   : > { %v2036_v58 = vpop.permute.xlu1 %2035 }
 0x50a   : > { %v2093_v52 = vadd.f32 %v2036_v58, %v1997_v40  ;;  %v2119_v5 = vmax.f32 %v2103_v39, 0.0 }
 0x50b   : > { %v2031_v33 = vpop.permute.xlu0 %2030 }
 0x50c   : > { %v2109_v4 = vmax.f32 %v2093_v52, 0.0  ;;  %2135 = vst.msk [vmem:[%s4004_s7 + $0x78] sm:$0xff] %vm1333_vm0, %v2119_v5  ;;  %v2092_v55 = vadd.f32 %v2031_v33, %v3872_v1 }
 0x50e   : > { %2125 = vst.msk [vmem:[%s4004_s7 + $0x28] sm:$0xff] %vm1333_vm0, %v2109_v4  ;;  %v2108_v56 = vmax.f32 %v2092_v55, 0.0 }
 0x510   : > { %2124 = vst.msk [vmem:[%s4004_s7 + $0x20] sm:$0xff] %vm1333_vm0, %v2108_v56 }
 0x511   : > { %v2051_v35 = vpop.permute.xlu1 %2050 }
 0x512   : > { %v2096_v32 = vadd.f32 %v2051_v35, %v2000_v31 }
 0x513   : > { %v2046_v0 = vpop.permute.xlu0 %2045 }
 0x514   : > { %v2112_v11 = vmax.f32 %v2096_v32, 0.0  ;;  %v2095_v1 = vadd.f32 %v2046_v0, %v3874_v37 }
 0x516   : > { %2128 = vst.msk [vmem:[%s4004_s7 + $0x40] sm:$0xff] %vm1333_vm0, %v2112_v11  ;;  %v2111_v21 = vmax.f32 %v2095_v1, 0.0 }
 0x518   : > { %2127 = vst.msk [vmem:[%s4004_s7 + $0x38] sm:$0xff] %vm1333_vm0, %v2111_v21 }
 0x519   : > { %v2066_v12 = vpop.permute.xlu1 %2065 }
 0x51a   : > { %v2099_v50 = vadd.f32 %v2066_v12, %v2003_v53 }
 0x51b   : > { %v2061_v42 = vpop.permute.xlu0 %2060 }
 0x51c   : > { %v2115_v15 = vmax.f32 %v2099_v50, 0.0  ;;  %v2098_v37 = vadd.f32 %v2061_v42, %v3878_v20 }
 0x51e   : > { %2131 = vst.msk [vmem:[%s4004_s7 + $0x58] sm:$0xff] %vm1333_vm0, %v2115_v15  ;;  %v2114_v49 = vmax.f32 %v2098_v37, 0.0 }
 0x520   : > { %2130 = vst.msk [vmem:[%s4004_s7 + $0x50] sm:$0xff] %vm1333_vm0, %v2114_v49 }
 0x521   : > { %v2081_v17 = vpop.permute.xlu1 %2080 }
 0x522   : > { %v2102_v19 = vadd.f32 %v2081_v17, %v2006_v46 }
 0x523   : > { %v2076_v13 = vpop.permute.xlu0 %2075 }
 0x524   : > { %v2118_v62 = vmax.f32 %v2102_v19, 0.0  ;;  %v2101_v20 = vadd.f32 %v2076_v13, %v3882_v54 }
 0x526   : > { %2134 = vst.msk [vmem:[%s4004_s7 + $0x70] sm:$0xff] %vm1333_vm0, %v2118_v62  ;;  %v2117_v36 = vmax.f32 %v2101_v20, 0.0 }
 0x528   : > { %2133 = vst.msk [vmem:[%s4004_s7 + $0x68] sm:$0xff] %vm1333_vm0, %v2117_v36 }
 0x529 PF: > { %s17_s9 = sadd.s32 1, %s2458_s9   ;;  %s4053_s13 = sld [smem:[#allocation11_spill]] }
 0x52a   : > { %p14_p5 = scmp.ge.s32.totalorder %s17_s9, 18   ;;  %s4054_s24 = smov %s2430_s25 }
 0x52b   : > { %s4055_s25 = smov %s2571_s17  ;;  %s4056_s26 = smov %s2446_s29 }
 0x52c   : > { %s4057_s27 = smov %s2450_s30  ;;  %s4058_s28 = smov %s2454_s8 }
 0x52d   : > { %s4059_s29 = smov %s4063_s10  ;;  %s4061_s8 = smov %s4071_s12 }
 0x52e   :  { %16 = sbr.rel (!%p14_p5) target bundleno = 5 (0x5), region = 137 }
 0x52f   : > { %s4060_s30 = smov %s4053_s13 }

</bundles_post_ra>
